<compile_context>
chip_gen: v5e
topology: v5e:2x2
jax: 0.10.0
libtpu: 0.0.40
codegen_flags: <defaults>
</compile_context>

<pallas_src>
import functools

import jax
import jax.numpy as jnp
from jax.experimental import pallas as pl
from jax.experimental.pallas import tpu as pltpu

LANE = 128
SUBLANE_BF16 = 16   # bf16 packs 16 rows per (8,128) f32-equivalent vreg tile


def _round_up(x, m):
    return (x + m - 1) // m * m


def _device_defaults():
    """(lane alignment for padded matmul dims, default batch tile)."""
    try:
        kind = jax.devices()[0].device_kind.lower()
    except Exception:
        kind = ""
    if "v5" in kind:            # v5e/v5p: 128-wide MXU passes, small scoped-VMEM default
        return 128, 256
    return 256, 512             # v6e / v7x: 256x256 MXU, larger tiles amortize step overhead


# ----------------------------------------------------------------------------
# Parameter construction (glue, plain JAX) — mirrors MADE.__init__
# ----------------------------------------------------------------------------
def _build_mask(n, in_features, out_features, self_connection):
    """Autoregressive mask in the torch (out, in) layout."""
    k = 0 if self_connection else -1
    base = jnp.tril(jnp.ones((n, n), jnp.float32), k)
    return jnp.tile(base, (out_features, in_features))        # (n*out, n*in)


def init_made_params(key, n, depth, width):
    """MaskedLinear-style init: uniform(-1/sqrt(in), 1/sqrt(in)), masked, and
    rescaled by sqrt(numel/sum).  The mask is folded into W here (exact:
    MADE.forward uses weight*mask and weight was already masked at init)."""
    specs = [(1, 1 if (depth == 0 and width == 1) else width, False)]
    specs += [(width, width, True)] * depth
    if width != 1:
        specs += [(width, 1, True)]

    layers = []
    for (fin, fout, sc) in specs:
        key, kw, kb = jax.random.split(key, 3)
        in_dim, out_dim = n * fin, n * fout
        bound = 1.0 / jnp.sqrt(jnp.float32(in_dim))
        w = jax.random.uniform(kw, (out_dim, in_dim), jnp.float32, -bound, bound)
        b = jax.random.uniform(kb, (1, out_dim), jnp.float32, -bound, bound)
        mask = _build_mask(n, fin, fout, sc)                   # (out_dim, in_dim)
        w = w * mask                                           # weight.data *= mask
        if n != 1:
            w = w * jnp.sqrt(mask.size / mask.sum())
        layers.append((w.T, b))                                # (in_dim, out_dim), pre-masked
    return layers


def prepare_params(layers, n, align):
    """Zero-pad every matmul dim (input, hidden, output) to a multiple of
    `align` lanes and cast weights to bf16 (biases stay f32).  Exact:
    padded x lanes / weight rows / weight cols / hidden biases are zero, so
    padded hidden lanes remain tanh(0)=0 through every layer; padded final
    outputs are sigmoid(0) and are sliced off by the wrapper."""
    dims = [layers[0][0].shape[0]] + [w.shape[1] for (w, _) in layers]
    pdims = [_round_up(d, align) for d in dims]

    prepped = []
    for li, (w, b) in enumerate(layers):
        w = jnp.asarray(w, jnp.float32)
        b = jnp.asarray(b, jnp.float32)
        w = jnp.pad(w, ((0, pdims[li] - w.shape[0]), (0, pdims[li + 1] - w.shape[1])))
        b = jnp.pad(b, ((0, 0), (0, pdims[li + 1] - b.shape[1])))
        prepped.append((w.astype(jnp.bfloat16), b))
    return prepped, pdims[0], pdims[-1]


# ----------------------------------------------------------------------------
# Pallas kernel: full MADE forward for one batch tile
# ----------------------------------------------------------------------------
def _made_kernel(n_layers, x_ref, *refs):
    # refs = (w0, b0, w1, b1, ..., out_ref); weights pre-masked, padded, bf16.
    out_ref = refs[-1]
    h = x_ref[...]                                   # already bf16, lane-dense
    for li in range(n_layers):
        w = refs[2 * li][...]
        b = refs[2 * li + 1][...]
        acc = jnp.dot(h, w, preferred_element_type=jnp.float32) + b   # MXU, f32 accum
        if li < n_layers - 1:
            h = jnp.tanh(acc).astype(jnp.bfloat16)   # EUP tanh, bf16 for next MXU pass
        else:
            # final nn.Sigmoid(): overflow-free form sigmoid(x) = 0.5*(tanh(x/2)+1)
            h = 0.5 * (jnp.tanh(0.5 * acc) + 1.0)
    out_ref[...] = h.astype(out_ref.dtype)


def made_forward(x, prepped, n, in_pad, out_pad, *, tile_b=None):
    """Pallas-backed MADE.forward.  x: (batch, n) -> (batch, n) float32."""
    batch = x.shape[0]
    n_layers = len(prepped)
    if tile_b is None:
        _, tile_b = _device_defaults()

    # Batch tile: multiple of 16 sublanes (bf16 path), capped at tile_b.
    tb = min(tile_b, _round_up(max(batch, SUBLANE_BF16), SUBLANE_BF16))
    tb = _round_up(tb, SUBLANE_BF16)
    padded_batch = _round_up(max(batch, tb), tb)

    # bf16 padded input — exact for ±1 spins, halves the streamed input bytes.
    xp = jnp.zeros((padded_batch, in_pad), jnp.bfloat16)
    xp = xp.at[:batch, :n].set(x.astype(jnp.bfloat16))

    weight_bytes = sum(w.size * w.dtype.itemsize + b.size * b.dtype.itemsize
                       for (w, b) in prepped)
    # TODO(synk): if resident bf16 weights ever exceed ~48 MiB (v7x per-core
    # VMEM), add a weight-streaming grid axis instead of keeping them resident.

    max_dim = max([in_pad, out_pad] + [w.shape[1] for (w, _) in prepped])
    vmem_limit = int(1.25 * (2 * tb * in_pad * 2        # double-buffered bf16 x tile
                             + 2 * tb * out_pad * 4     # double-buffered f32 out tile
                             + 3 * tb * max_dim * 4     # activation temporaries
                             + 2 * weight_bytes))       # params (worst case: double-buffered)
    vmem_limit = min(max(vmem_limit + (4 << 20), 16 << 20), 64 << 20)

    def run(single_buffer_weights):
        wmode = dict(pipeline_mode=pl.Buffered(1)) if single_buffer_weights else {}
        in_specs = [pl.BlockSpec((tb, in_pad), lambda i: (i, 0))]       # pipelined x tiles
        flat = []
        for (w, b) in prepped:
            flat.extend([w, b])
            in_specs.append(pl.BlockSpec(w.shape, lambda i: (0, 0), **wmode))  # resident W
            in_specs.append(pl.BlockSpec(b.shape, lambda i: (0, 0), **wmode))  # resident b
        kernel = functools.partial(_made_kernel, n_layers)
        return pl.pallas_call(
            kernel,
            out_shape=jax.ShapeDtypeStruct((padded_batch, out_pad), jnp.float32),
            grid=(padded_batch // tb,),
            in_specs=in_specs,
            out_specs=pl.BlockSpec((tb, out_pad), lambda i: (i, 0)),    # lane-dense store
            compiler_params=pltpu.CompilerParams(
                dimension_semantics=("parallel",),                      # megacore on v7x
                vmem_limit_bytes=vmem_limit),
        )(xp, *flat)

    try:
        out = run(True)       # single-buffered resident params (halved weight VMEM)
    except Exception:
        out = run(False)      # fall back to default double buffering
    return out[:batch, :n]


# ----------------------------------------------------------------------------
# Pure-JAX references for verification
# ----------------------------------------------------------------------------
def made_ref(x, layers, cast_bf16=False):
    n_layers = len(layers)
    h = x.astype(jnp.float32)
    for li, (w, b) in enumerate(layers):
        if cast_bf16:
            hd = jnp.dot(h.astype(jnp.bfloat16), w.astype(jnp.bfloat16),
                         preferred_element_type=jnp.float32)
        else:
            hd = jnp.dot(h, w, preferred_element_type=jnp.float32)
        h = hd + b
        h = jnp.tanh(h) if li < n_layers - 1 else jax.nn.sigmoid(h)
    return h


if __name__ == "__main__":
    n, depth, width = 8, 2, 4       # MADE(n=8, depth=2, width=4, activator='tanh')
    batch = 2

    key = jax.random.PRNGKey(0)
    key, kparam, kx = jax.random.split(key, 3)

    align, _ = _device_defaults()
    layers = init_made_params(kparam, n, depth, width)
    prepped, in_pad, out_pad = prepare_params(layers, n, align)

    # spin inputs in {-1, +1}, as MADE consumes
    x = 2.0 * jax.random.bernoulli(kx, 0.5, (batch, n)).astype(jnp.float32) - 1.0

    out = jax.block_until_ready(made_forward(x, prepped, n, in_pad, out_pad))
    assert out.shape == (batch, n)

    # Kernel-precision reference (bf16 MXU operands, f32 accum/activations).
    ref_bf16 = jax.block_until_ready(made_ref(x, layers, cast_bf16=True))
    assert jnp.allclose(out, ref_bf16, rtol=5e-3, atol=5e-3), (out, ref_bf16)

    # Module-precision (f32) sanity check — looser tolerance due to bf16 weights.
    ref_f32 = jax.block_until_ready(made_ref(x, layers, cast_bf16=False))
    assert jnp.allclose(out, ref_f32, rtol=3e-2, atol=3e-2), (out, ref_f32)

    print("KERNEL_OK")
</pallas_src>

<mosaic_0001>
module attributes {stable_mosaic.version = 11 : i64} {
  func.func @_made_kernel(%arg0: i32, %arg1: memref<16x256xbf16, #tpu.memory_space<vmem>>, %arg2: memref<256x256xbf16, #tpu.memory_space<vmem>>, %arg3: memref<1x256xf32, #tpu.memory_space<vmem>>, %arg4: memref<256x256xbf16, #tpu.memory_space<vmem>>, %arg5: memref<1x256xf32, #tpu.memory_space<vmem>>, %arg6: memref<256x256xbf16, #tpu.memory_space<vmem>>, %arg7: memref<1x256xf32, #tpu.memory_space<vmem>>, %arg8: memref<256x256xbf16, #tpu.memory_space<vmem>>, %arg9: memref<1x256xf32, #tpu.memory_space<vmem>>, %arg10: memref<16x256xf32, #tpu.memory_space<vmem>>) attributes {dimension_semantics = [#tpu.dimension_semantics<parallel>], iteration_bounds = array<i64: 1>, scalar_prefetch = 0 : i64, scratch_operands = 0 : i64, tpu.core_type = #tpu.core_type<tc>, window_params = [{transform_indices = @transform_0, window_bounds = array<i64: 16, 256>}, {pipeline_mode = #tpu.pipeline_mode<synchronous>, transform_indices = @transform_1, window_bounds = array<i64: 256, 256>}, {pipeline_mode = #tpu.pipeline_mode<synchronous>, transform_indices = @transform_2, window_bounds = array<i64: 1, 256>}, {pipeline_mode = #tpu.pipeline_mode<synchronous>, transform_indices = @transform_3, window_bounds = array<i64: 256, 256>}, {pipeline_mode = #tpu.pipeline_mode<synchronous>, transform_indices = @transform_4, window_bounds = array<i64: 1, 256>}, {pipeline_mode = #tpu.pipeline_mode<synchronous>, transform_indices = @transform_5, window_bounds = array<i64: 256, 256>}, {pipeline_mode = #tpu.pipeline_mode<synchronous>, transform_indices = @transform_6, window_bounds = array<i64: 1, 256>}, {pipeline_mode = #tpu.pipeline_mode<synchronous>, transform_indices = @transform_7, window_bounds = array<i64: 256, 256>}, {pipeline_mode = #tpu.pipeline_mode<synchronous>, transform_indices = @transform_8, window_bounds = array<i64: 1, 256>}, {transform_indices = @transform_9, window_bounds = array<i64: 16, 256>}]} {
    %c0 = arith.constant 0 : index
    %c0_0 = arith.constant 0 : index
    %0 = vector.load %arg1[%c0, %c0_0] : memref<16x256xbf16, #tpu.memory_space<vmem>>, vector<16x256xbf16>
    %c0_1 = arith.constant 0 : index
    %c0_2 = arith.constant 0 : index
    %1 = vector.load %arg2[%c0_1, %c0_2] : memref<256x256xbf16, #tpu.memory_space<vmem>>, vector<256x256xbf16>
    %c0_3 = arith.constant 0 : index
    %c0_4 = arith.constant 0 : index
    %2 = vector.load %arg3[%c0_3, %c0_4] : memref<1x256xf32, #tpu.memory_space<vmem>>, vector<1x256xf32>
    %cst = arith.constant dense<0.000000e+00> : vector<16x256xf32>
    %3 = tpu.matmul %0, %1, %cst {dimension_numbers = #tpu.dot_dimension_numbers<[1], [0], [0], [1], [0, 0, 1, 1], [], []>} : vector<16x256xbf16>, vector<256x256xbf16>, vector<16x256xf32> -> vector<16x256xf32>
    %4 = vector.broadcast %2 : vector<1x256xf32> to vector<16x256xf32>
    %5 = arith.addf %3, %4 : vector<16x256xf32>
    %6 = math.tanh %5 : vector<16x256xf32>
    %7 = arith.truncf %6 : vector<16x256xf32> to vector<16x256xbf16>
    %c0_5 = arith.constant 0 : index
    %c0_6 = arith.constant 0 : index
    %8 = vector.load %arg4[%c0_5, %c0_6] : memref<256x256xbf16, #tpu.memory_space<vmem>>, vector<256x256xbf16>
    %c0_7 = arith.constant 0 : index
    %c0_8 = arith.constant 0 : index
    %9 = vector.load %arg5[%c0_7, %c0_8] : memref<1x256xf32, #tpu.memory_space<vmem>>, vector<1x256xf32>
    %cst_9 = arith.constant dense<0.000000e+00> : vector<16x256xf32>
    %10 = tpu.matmul %7, %8, %cst_9 {dimension_numbers = #tpu.dot_dimension_numbers<[1], [0], [0], [1], [0, 0, 1, 1], [], []>} : vector<16x256xbf16>, vector<256x256xbf16>, vector<16x256xf32> -> vector<16x256xf32>
    %11 = vector.broadcast %9 : vector<1x256xf32> to vector<16x256xf32>
    %12 = arith.addf %10, %11 : vector<16x256xf32>
    %13 = math.tanh %12 : vector<16x256xf32>
    %14 = arith.truncf %13 : vector<16x256xf32> to vector<16x256xbf16>
    %c0_10 = arith.constant 0 : index
    %c0_11 = arith.constant 0 : index
    %15 = vector.load %arg6[%c0_10, %c0_11] : memref<256x256xbf16, #tpu.memory_space<vmem>>, vector<256x256xbf16>
    %c0_12 = arith.constant 0 : index
    %c0_13 = arith.constant 0 : index
    %16 = vector.load %arg7[%c0_12, %c0_13] : memref<1x256xf32, #tpu.memory_space<vmem>>, vector<1x256xf32>
    %cst_14 = arith.constant dense<0.000000e+00> : vector<16x256xf32>
    %17 = tpu.matmul %14, %15, %cst_14 {dimension_numbers = #tpu.dot_dimension_numbers<[1], [0], [0], [1], [0, 0, 1, 1], [], []>} : vector<16x256xbf16>, vector<256x256xbf16>, vector<16x256xf32> -> vector<16x256xf32>
    %18 = vector.broadcast %16 : vector<1x256xf32> to vector<16x256xf32>
    %19 = arith.addf %17, %18 : vector<16x256xf32>
    %20 = math.tanh %19 : vector<16x256xf32>
    %21 = arith.truncf %20 : vector<16x256xf32> to vector<16x256xbf16>
    %c0_15 = arith.constant 0 : index
    %c0_16 = arith.constant 0 : index
    %22 = vector.load %arg8[%c0_15, %c0_16] : memref<256x256xbf16, #tpu.memory_space<vmem>>, vector<256x256xbf16>
    %c0_17 = arith.constant 0 : index
    %c0_18 = arith.constant 0 : index
    %23 = vector.load %arg9[%c0_17, %c0_18] : memref<1x256xf32, #tpu.memory_space<vmem>>, vector<1x256xf32>
    %cst_19 = arith.constant dense<0.000000e+00> : vector<16x256xf32>
    %24 = tpu.matmul %21, %22, %cst_19 {dimension_numbers = #tpu.dot_dimension_numbers<[1], [0], [0], [1], [0, 0, 1, 1], [], []>} : vector<16x256xbf16>, vector<256x256xbf16>, vector<16x256xf32> -> vector<16x256xf32>
    %25 = vector.broadcast %23 : vector<1x256xf32> to vector<16x256xf32>
    %26 = arith.addf %24, %25 : vector<16x256xf32>
    %cst_20 = arith.constant 5.000000e-01 : f32
    %27 = vector.broadcast %cst_20 : f32 to vector<16x256xf32>
    %28 = arith.mulf %27, %26 : vector<16x256xf32>
    %29 = math.tanh %28 : vector<16x256xf32>
    %cst_21 = arith.constant 1.000000e+00 : f32
    %30 = vector.broadcast %cst_21 : f32 to vector<16x256xf32>
    %31 = arith.addf %29, %30 : vector<16x256xf32>
    %cst_22 = arith.constant 5.000000e-01 : f32
    %32 = vector.broadcast %cst_22 : f32 to vector<16x256xf32>
    %33 = arith.mulf %32, %31 : vector<16x256xf32>
    %c0_23 = arith.constant 0 : index
    %c0_24 = arith.constant 0 : index
    %34 = vector.load %arg10[%c0_23, %c0_24] : memref<16x256xf32, #tpu.memory_space<vmem>>, vector<16x256xf32>
    tpu.vector_store %arg10[%c0_23, %c0_24], %33 {strides = array<i32>} : memref<16x256xf32, #tpu.memory_space<vmem>>, vector<16x256xf32>,
    return
  }
  func.func @transform_0(%arg0: i32) -> (i32, i32) {
    %c0_i32 = arith.constant 0 : i32
    %c0_i32_0 = arith.constant 0 : i32
    return %arg0, %c0_i32 : i32, i32
  }
  func.func @transform_1(%arg0: i32) -> (i32, i32) {
    %c0_i32 = arith.constant 0 : i32
    %c0_i32_0 = arith.constant 0 : i32
    %c0_i32_1 = arith.constant 0 : i32
    return %c0_i32, %c0_i32_0 : i32, i32
  }
  func.func @transform_2(%arg0: i32) -> (i32, i32) {
    %c0_i32 = arith.constant 0 : i32
    %c0_i32_0 = arith.constant 0 : i32
    %c0_i32_1 = arith.constant 0 : i32
    return %c0_i32, %c0_i32_0 : i32, i32
  }
  func.func @transform_3(%arg0: i32) -> (i32, i32) {
    %c0_i32 = arith.constant 0 : i32
    %c0_i32_0 = arith.constant 0 : i32
    %c0_i32_1 = arith.constant 0 : i32
    return %c0_i32, %c0_i32_0 : i32, i32
  }
  func.func @transform_4(%arg0: i32) -> (i32, i32) {
    %c0_i32 = arith.constant 0 : i32
    %c0_i32_0 = arith.constant 0 : i32
    %c0_i32_1 = arith.constant 0 : i32
    return %c0_i32, %c0_i32_0 : i32, i32
  }
  func.func @transform_5(%arg0: i32) -> (i32, i32) {
    %c0_i32 = arith.constant 0 : i32
    %c0_i32_0 = arith.constant 0 : i32
    %c0_i32_1 = arith.constant 0 : i32
    return %c0_i32, %c0_i32_0 : i32, i32
  }
  func.func @transform_6(%arg0: i32) -> (i32, i32) {
    %c0_i32 = arith.constant 0 : i32
    %c0_i32_0 = arith.constant 0 : i32
    %c0_i32_1 = arith.constant 0 : i32
    return %c0_i32, %c0_i32_0 : i32, i32
  }
  func.func @transform_7(%arg0: i32) -> (i32, i32) {
    %c0_i32 = arith.constant 0 : i32
    %c0_i32_0 = arith.constant 0 : i32
    %c0_i32_1 = arith.constant 0 : i32
    return %c0_i32, %c0_i32_0 : i32, i32
  }
  func.func @transform_8(%arg0: i32) -> (i32, i32) {
    %c0_i32 = arith.constant 0 : i32
    %c0_i32_0 = arith.constant 0 : i32
    %c0_i32_1 = arith.constant 0 : i32
    return %c0_i32, %c0_i32_0 : i32, i32
  }
  func.func @transform_9(%arg0: i32) -> (i32, i32) {
    %c0_i32 = arith.constant 0 : i32
    %c0_i32_0 = arith.constant 0 : i32
    return %arg0, %c0_i32 : i32, i32
  }
}

module attributes {stable_mosaic.version = 11 : i64} {
  func.func @_made_kernel(%arg0: i32, %arg1: memref<16x256xbf16, #tpu.memory_space<vmem>>, %arg2: memref<256x256xbf16, #tpu.memory_space<vmem>>, %arg3: memref<1x256xf32, #tpu.memory_space<vmem>>, %arg4: memref<256x256xbf16, #tpu.memory_space<vmem>>, %arg5: memref<1x256xf32, #tpu.memory_space<vmem>>, %arg6: memref<256x256xbf16, #tpu.memory_space<vmem>>, %arg7: memref<1x256xf32, #tpu.memory_space<vmem>>, %arg8: memref<256x256xbf16, #tpu.memory_space<vmem>>, %arg9: memref<1x256xf32, #tpu.memory_space<vmem>>, %arg10: memref<16x256xf32, #tpu.memory_space<vmem>>) attributes {dimension_semantics = [#tpu.dimension_semantics<parallel>], iteration_bounds = array<i64: 1>, scalar_prefetch = 0 : i64, scratch_operands = 0 : i64, tpu.core_type = #tpu.core_type<tc>, window_params = [{transform_indices = @transform_0, window_bounds = array<i64: 16, 256>}, {pipeline_mode = #tpu.pipeline_mode<synchronous>, transform_indices = @transform_1, window_bounds = array<i64: 256, 256>}, {pipeline_mode = #tpu.pipeline_mode<synchronous>, transform_indices = @transform_2, window_bounds = array<i64: 1, 256>}, {pipeline_mode = #tpu.pipeline_mode<synchronous>, transform_indices = @transform_3, window_bounds = array<i64: 256, 256>}, {pipeline_mode = #tpu.pipeline_mode<synchronous>, transform_indices = @transform_4, window_bounds = array<i64: 1, 256>}, {pipeline_mode = #tpu.pipeline_mode<synchronous>, transform_indices = @transform_5, window_bounds = array<i64: 256, 256>}, {pipeline_mode = #tpu.pipeline_mode<synchronous>, transform_indices = @transform_6, window_bounds = array<i64: 1, 256>}, {pipeline_mode = #tpu.pipeline_mode<synchronous>, transform_indices = @transform_7, window_bounds = array<i64: 256, 256>}, {pipeline_mode = #tpu.pipeline_mode<synchronous>, transform_indices = @transform_8, window_bounds = array<i64: 1, 256>}, {transform_indices = @transform_9, window_bounds = array<i64: 16, 256>}]} {
    %c0 = arith.constant 0 : index
    %c0_0 = arith.constant 0 : index
    %0 = vector.load %arg1[%c0, %c0_0] : memref<16x256xbf16, #tpu.memory_space<vmem>>, vector<16x256xbf16>
    %c0_1 = arith.constant 0 : index
    %c0_2 = arith.constant 0 : index
    %1 = vector.load %arg2[%c0_1, %c0_2] : memref<256x256xbf16, #tpu.memory_space<vmem>>, vector<256x256xbf16>
    %c0_3 = arith.constant 0 : index
    %c0_4 = arith.constant 0 : index
    %2 = vector.load %arg3[%c0_3, %c0_4] : memref<1x256xf32, #tpu.memory_space<vmem>>, vector<1x256xf32>
    %cst = arith.constant dense<0.000000e+00> : vector<16x256xf32>
    %3 = tpu.matmul %0, %1, %cst {dimension_numbers = #tpu.dot_dimension_numbers<[1], [0], [0], [1], [0, 0, 1, 1], [], []>} : vector<16x256xbf16>, vector<256x256xbf16>, vector<16x256xf32> -> vector<16x256xf32>
    %4 = vector.broadcast %2 : vector<1x256xf32> to vector<16x256xf32>
    %5 = arith.addf %3, %4 : vector<16x256xf32>
    %6 = math.tanh %5 : vector<16x256xf32>
    %7 = arith.truncf %6 : vector<16x256xf32> to vector<16x256xbf16>
    %c0_5 = arith.constant 0 : index
    %c0_6 = arith.constant 0 : index
    %8 = vector.load %arg4[%c0_5, %c0_6] : memref<256x256xbf16, #tpu.memory_space<vmem>>, vector<256x256xbf16>
    %c0_7 = arith.constant 0 : index
    %c0_8 = arith.constant 0 : index
    %9 = vector.load %arg5[%c0_7, %c0_8] : memref<1x256xf32, #tpu.memory_space<vmem>>, vector<1x256xf32>
    %cst_9 = arith.constant dense<0.000000e+00> : vector<16x256xf32>
    %10 = tpu.matmul %7, %8, %cst_9 {dimension_numbers = #tpu.dot_dimension_numbers<[1], [0], [0], [1], [0, 0, 1, 1], [], []>} : vector<16x256xbf16>, vector<256x256xbf16>, vector<16x256xf32> -> vector<16x256xf32>
    %11 = vector.broadcast %9 : vector<1x256xf32> to vector<16x256xf32>
    %12 = arith.addf %10, %11 : vector<16x256xf32>
    %13 = math.tanh %12 : vector<16x256xf32>
    %14 = arith.truncf %13 : vector<16x256xf32> to vector<16x256xbf16>
    %c0_10 = arith.constant 0 : index
    %c0_11 = arith.constant 0 : index
    %15 = vector.load %arg6[%c0_10, %c0_11] : memref<256x256xbf16, #tpu.memory_space<vmem>>, vector<256x256xbf16>
    %c0_12 = arith.constant 0 : index
    %c0_13 = arith.constant 0 : index
    %16 = vector.load %arg7[%c0_12, %c0_13] : memref<1x256xf32, #tpu.memory_space<vmem>>, vector<1x256xf32>
    %cst_14 = arith.constant dense<0.000000e+00> : vector<16x256xf32>
    %17 = tpu.matmul %14, %15, %cst_14 {dimension_numbers = #tpu.dot_dimension_numbers<[1], [0], [0], [1], [0, 0, 1, 1], [], []>} : vector<16x256xbf16>, vector<256x256xbf16>, vector<16x256xf32> -> vector<16x256xf32>
    %18 = vector.broadcast %16 : vector<1x256xf32> to vector<16x256xf32>
    %19 = arith.addf %17, %18 : vector<16x256xf32>
    %20 = math.tanh %19 : vector<16x256xf32>
    %21 = arith.truncf %20 : vector<16x256xf32> to vector<16x256xbf16>
    %c0_15 = arith.constant 0 : index
    %c0_16 = arith.constant 0 : index
    %22 = vector.load %arg8[%c0_15, %c0_16] : memref<256x256xbf16, #tpu.memory_space<vmem>>, vector<256x256xbf16>
    %c0_17 = arith.constant 0 : index
    %c0_18 = arith.constant 0 : index
    %23 = vector.load %arg9[%c0_17, %c0_18] : memref<1x256xf32, #tpu.memory_space<vmem>>, vector<1x256xf32>
    %cst_19 = arith.constant dense<0.000000e+00> : vector<16x256xf32>
    %24 = tpu.matmul %21, %22, %cst_19 {dimension_numbers = #tpu.dot_dimension_numbers<[1], [0], [0], [1], [0, 0, 1, 1], [], []>} : vector<16x256xbf16>, vector<256x256xbf16>, vector<16x256xf32> -> vector<16x256xf32>
    %25 = vector.broadcast %23 : vector<1x256xf32> to vector<16x256xf32>
    %26 = arith.addf %24, %25 : vector<16x256xf32>
    %cst_20 = arith.constant 5.000000e-01 : f32
    %27 = vector.broadcast %cst_20 : f32 to vector<16x256xf32>
    %28 = arith.mulf %27, %26 : vector<16x256xf32>
    %29 = math.tanh %28 : vector<16x256xf32>
    %cst_21 = arith.constant 1.000000e+00 : f32
    %30 = vector.broadcast %cst_21 : f32 to vector<16x256xf32>
    %31 = arith.addf %29, %30 : vector<16x256xf32>
    %cst_22 = arith.constant 5.000000e-01 : f32
    %32 = vector.broadcast %cst_22 : f32 to vector<16x256xf32>
    %33 = arith.mulf %32, %31 : vector<16x256xf32>
    %c0_23 = arith.constant 0 : index
    %c0_24 = arith.constant 0 : index
    %34 = vector.load %arg10[%c0_23, %c0_24] : memref<16x256xf32, #tpu.memory_space<vmem>>, vector<16x256xf32>
    tpu.vector_store %arg10[%c0_23, %c0_24], %33 {strides = array<i32>} : memref<16x256xf32, #tpu.memory_space<vmem>>, vector<16x256xf32>,
    return
  }
  func.func @transform_0(%arg0: i32) -> (i32, i32) {
    %c0_i32 = arith.constant 0 : i32
    %c0_i32_0 = arith.constant 0 : i32
    return %arg0, %c0_i32 : i32, i32
  }
  func.func @transform_1(%arg0: i32) -> (i32, i32) {
    %c0_i32 = arith.constant 0 : i32
    %c0_i32_0 = arith.constant 0 : i32
    %c0_i32_1 = arith.constant 0 : i32
    return %c0_i32, %c0_i32_0 : i32, i32
  }
  func.func @transform_2(%arg0: i32) -> (i32, i32) {
    %c0_i32 = arith.constant 0 : i32
    %c0_i32_0 = arith.constant 0 : i32
    %c0_i32_1 = arith.constant 0 : i32
    return %c0_i32, %c0_i32_0 : i32, i32
  }
  func.func @transform_3(%arg0: i32) -> (i32, i32) {
    %c0_i32 = arith.constant 0 : i32
    %c0_i32_0 = arith.constant 0 : i32
    %c0_i32_1 = arith.constant 0 : i32
    return %c0_i32, %c0_i32_0 : i32, i32
  }
  func.func @transform_4(%arg0: i32) -> (i32, i32) {
    %c0_i32 = arith.constant 0 : i32
    %c0_i32_0 = arith.constant 0 : i32
    %c0_i32_1 = arith.constant 0 : i32
    return %c0_i32, %c0_i32_0 : i32, i32
  }
  func.func @transform_5(%arg0: i32) -> (i32, i32) {
    %c0_i32 = arith.constant 0 : i32
    %c0_i32_0 = arith.constant 0 : i32
    %c0_i32_1 = arith.constant 0 : i32
    return %c0_i32, %c0_i32_0 : i32, i32
  }
  func.func @transform_6(%arg0: i32) -> (i32, i32) {
    %c0_i32 = arith.constant 0 : i32
    %c0_i32_0 = arith.constant 0 : i32
    %c0_i32_1 = arith.constant 0 : i32
    return %c0_i32, %c0_i32_0 : i32, i32
  }
  func.func @transform_7(%arg0: i32) -> (i32, i32) {
    %c0_i32 = arith.constant 0 : i32
    %c0_i32_0 = arith.constant 0 : i32
    %c0_i32_1 = arith.constant 0 : i32
    return %c0_i32, %c0_i32_0 : i32, i32
  }
  func.func @transform_8(%arg0: i32) -> (i32, i32) {
    %c0_i32 = arith.constant 0 : i32
    %c0_i32_0 = arith.constant 0 : i32
    %c0_i32_1 = arith.constant 0 : i32
    return %c0_i32, %c0_i32_0 : i32, i32
  }
  func.func @transform_9(%arg0: i32) -> (i32, i32) {
    %c0_i32 = arith.constant 0 : i32
    %c0_i32_0 = arith.constant 0 : i32
    return %arg0, %c0_i32 : i32, i32
  }
}

</mosaic_0001>

<bundles_post_ra>
// kernel: tpu_custom_call.1
= control target key start
LH: loop header
LB: loop body
LE: loop exit
PB: predicated region body
PF: predicated region fallthrough
CT: control target
= control target key end

     0   :  { %14 = vsyncpa [#allocation3], 0  ;;  %s2190_s0 = inlined_call_operand.hbm [shape: bf16[16,256], index: 0, kind: input, shape index: {}]   ;;  %s2191_s1 = inlined_call_operand.hbm [shape: bf16[256,256], index: 1, kind: input, shape index: {}]   ;;  %s2192_s2 = inlined_call_operand.hbm [shape: f32[1,256], index: 2, kind: input, shape index: {}]   ;;  %s2193_s3 = inlined_call_operand.hbm [shape: bf16[256,256], index: 3, kind: input, shape index: {}]   ;;  %s2194_s4 = inlined_call_operand.vmem [shape: f32[1,256], index: 4, kind: input, shape index: {}]   ;;  %s2195_s5 = inlined_call_operand.hbm [shape: bf16[256,256], index: 5, kind: input, shape index: {}]   ;;  %s2196_s6 = inlined_call_operand.vmem [shape: f32[1,256], index: 6, kind: input, shape index: {}]   ;;  %s2197_s7 = inlined_call_operand.hbm [shape: bf16[256,256], index: 7, kind: input, shape index: {}]   ;;  %s2198_s8 = inlined_call_operand.vmem [shape: f32[1,256], index: 8, kind: input, shape index: {}]   ;;  %s2199_s9 = inlined_call_operand.hbm [shape: f32[16,256], index: 9, kind: output, shape index: {}]  }
   0x1   :  { %15 = vsyncpa [#allocation6], 0 }
   0x2   :  { %16 = vsyncpa [#allocation9], 0 }
   0x3   :  { %17 = vsyncpa [#allocation12], 0 }
   0x4   :  { %18 = vsyncpa [#allocation4], 0  ;;  %s36_s11 = sshll.u32 %s2191_s1, 4  ;;  %s2084_s12 = smov [#allocation5]   ;;  %s37_s11 = int_to_ptr.hbm [resolvable:$true] %s36_s11 }
   0x5   :  { %s38_s13 = sshll.u32 %s2084_s12, 4  ;;  %s60_s16 = sshll.u32 %s2193_s3, 4  ;;  %s39_s13 = int_to_ptr.vmem [resolvable:$true] %s38_s13  ;;  %s61_s16 = int_to_ptr.hbm [resolvable:$true] %s60_s16 }
   0x6   :  { %s2085_s17 = smov 128   ;;  %s2086_s18 = smov 8  }
   0x7   :  { %44 = dma.hbm_to_vmem [thread:$0]  %s37_s11, 4096, %s39_s13, [#allocation6], %s2085_s17, %s2085_s17, %s2086_s18  }
   0x8   :  { %s2087_s19 = smov [#allocation8]   ;;  %s23_s1 = sshll.u32 %s2190_s0, 4  ;;  %s24_s1 = int_to_ptr.hbm [resolvable:$true] %s23_s1 }
   0x9   :  { %s62_s20 = sshll.u32 %s2087_s19, 4  ;;  %s50_s24 = sshll.u32 %s2192_s2, 4  ;;  %s63_s20 = int_to_ptr.vmem [resolvable:$true] %s62_s20  ;;  %s51_s24 = int_to_ptr.hbm [resolvable:$true] %s50_s24 }
   0xa   :  { %68 = dma.hbm_to_vmem [thread:$0]  %s61_s16, 4096, %s63_s20, [#allocation9], %s2085_s17, %s2085_s17, %s2086_s18  }
   0xb   :  { %s2088_s25 = smov [#allocation2]   ;;  %s2089_s27 = smov [#allocation7]  }
   0xc   :  { %s25_s26 = sshll.u32 %s2088_s25, 4  ;;  %s52_s0 = sshll.u32 %s2089_s27, 4  ;;  %s26_s26 = int_to_ptr.vmem [resolvable:$true] %s25_s26  ;;  %s53_s0 = int_to_ptr.vmem [resolvable:$true] %s52_s0 }
   0xd   :  { %31 = dma.hbm_to_vmem [thread:$0]  %s24_s1, 256, %s26_s26, [#allocation3], %s2085_s17, %s2085_s17, %s2086_s18  }
   0xe   :  { %s75_s30 = sshll.u32 %s2195_s5, 4  ;;  %s90_s2 = sshll.u32 %s2197_s7, 4  ;;  %s76_s30 = int_to_ptr.hbm [resolvable:$true] %s75_s30  ;;  %s91_s2 = int_to_ptr.hbm [resolvable:$true] %s90_s2 }
   0xf   :  { %55 = dma.hbm_to_vmem [thread:$0]  %s51_s24, 32, %s53_s0, [#allocation6]  }
  0x10   :  { %s2090_s12 = smov [#allocation10]   ;;  %s2091_s14 = smov [#allocation11]  }
  0x11   :  { %s77_s13 = sshll.u32 %s2090_s12, 4  ;;  %s92_s15 = sshll.u32 %s2091_s14, 4  ;;  %s78_s13 = int_to_ptr.vmem [resolvable:$true] %s77_s13  ;;  %s93_s15 = int_to_ptr.vmem [resolvable:$true] %s92_s15 }
  0x12   :  { %83 = dma.hbm_to_vmem [thread:$0]  %s76_s30, 4096, %s78_s13, [#allocation9], %s2085_s17, %s2085_s17, %s2086_s18  }
  0x13   :  { %98 = dma.hbm_to_vmem [thread:$0]  %s91_s2, 4096, %s93_s15, [#allocation12], %s2085_s17, %s2085_s17, %s2086_s18  }
  0x14   :  { %2074 = dma.done.wait [#allocation3], 256  }
  0x15   :  { %2075 = vsyncadd [#allocation3], 4294967040 }
  0x16   :  { %2076 = dma.done.wait [#allocation6], 4128  }
  0x17   :  { %2077 = vsyncadd [#allocation6], 4294963168 }
  0x18   :  { %2078 = dma.done.wait [#allocation9], 8192  }
  0x19   :  { %2079 = vsyncadd [#allocation9], 4294959104 }
  0x1a   :  { %2080 = dma.done.wait [#allocation12], 4096  }
  0x1b   :  { %2081 = vsyncadd [#allocation12], 4294963200  ;;  %v1279_v0 = vld [vmem:[#allocation5 + $0x70] sm:$0xf]  ;;  %v1750_v1 = vld [vmem:[#allocation5 + $0x74] sm:$0xf0] }
  0x1c   :  { %v1343_v2 = vld [vmem:[#allocation5 + $0xf0] sm:$0xf]  ;;  %v1280_v3 = vor.u32 %v1750_v1, %v1279_v0  ;;  %v1766_v4 = vld [vmem:[#allocation5 + $0xf4] sm:$0xf0]  ;;  %v1749_v5 = vld [vmem:[#allocation5 + $0x74] sm:$0xf] }
  0x1d   :  { %v1281_v6 = vld [vmem:[#allocation5 + $0x78] sm:$0xf0]  ;;  %v1344_v7 = vor.u32 %v1766_v4, %v1343_v2  ;;  %v1765_v9 = vld [vmem:[#allocation5 + $0xf4] sm:$0xf]  ;;  %v1271_v11 = vld [vmem:[#allocation5 + $0x60] sm:$0xf] }
  0x1e   :  { %v1284_v8 = vor.u32 %v1749_v5, %v1281_v6  ;;  %v1345_v10 = vld [vmem:[#allocation5 + $0xf8] sm:$0xf0]  ;;  %335 = vmatpush.bf16.msra.mxu0 %v1280_v3  ;;  %v1748_v13 = vld [vmem:[#allocation5 + $0x64] sm:$0xf0]  ;;  %v1335_v14 = vld [vmem:[#allocation5 + $0xe0] sm:$0xf] }
  0x1f   :  { %v1348_v12 = vor.u32 %v1765_v9, %v1345_v10  ;;  %v1764_v15 = vld [vmem:[#allocation5 + $0xe4] sm:$0xf0]  ;;  %349 = vmatpush.bf16.msra.mxu1 %v1344_v7  ;;  %v1272_v16 = vor.u32 %v1748_v13, %v1271_v11  ;;  %v1747_v18 = vld [vmem:[#allocation5 + $0x64] sm:$0xf]  ;;  %v1273_v19 = vld [vmem:[#allocation5 + $0x68] sm:$0xf0] }
  0x20   :  { %363 = vmatpush.bf16.msra.mxu2 %v1284_v8  ;;  %v1336_v17 = vor.u32 %v1764_v15, %v1335_v14  ;;  %v1763_v20 = vld [vmem:[#allocation5 + $0xe4] sm:$0xf]  ;;  %v1276_v21 = vor.u32 %v1747_v18, %v1273_v19  ;;  %v1337_v22 = vld [vmem:[#allocation5 + $0xe8] sm:$0xf0]  ;;  %v1263_v23 = vld [vmem:[#allocation5 + $0x50] sm:$0xf] }
  0x21   :  { %377 = vmatpush.bf16.msra.mxu3 %v1348_v12  ;;  %v1746_v24 = vld [vmem:[#allocation5 + $0x54] sm:$0xf0]  ;;  %v1340_v25 = vor.u32 %v1763_v20, %v1337_v22  ;;  %v1327_v26 = vld [vmem:[#allocation5 + $0xd0] sm:$0xf]  ;;  %v1745_v28 = vld [vmem:[#allocation5 + $0x54] sm:$0xf] }
  0x22   :  { %v1762_v27 = vld [vmem:[#allocation5 + $0xd4] sm:$0xf0]  ;;  %336 = vmatpush.bf16.msra.mxu0 %v1272_v16  ;;  %v1264_v29 = vor.u32 %v1746_v24, %v1263_v23  ;;  %v1265_v30 = vld [vmem:[#allocation5 + $0x58] sm:$0xf0]  ;;  %v1761_v31 = vld [vmem:[#allocation5 + $0xd4] sm:$0xf] }
  0x23   :  { %v1329_v32 = vld [vmem:[#allocation5 + $0xd8] sm:$0xf0]  ;;  %350 = vmatpush.bf16.msra.mxu1 %v1336_v17  ;;  %v1328_v33 = vor.u32 %v1762_v27, %v1327_v26  ;;  %v1268_v34 = vor.u32 %v1745_v28, %v1265_v30  ;;  %v1255_v35 = vld [vmem:[#allocation5 + $0x40] sm:$0xf]  ;;  %v1744_v36 = vld [vmem:[#allocation5 + $0x44] sm:$0xf0] }
  0x24   :  { %364 = vmatpush.bf16.msra.mxu2 %v1276_v21  ;;  %v1319_v37 = vld [vmem:[#allocation5 + $0xc0] sm:$0xf]  ;;  %v1332_v38 = vor.u32 %v1761_v31, %v1329_v32  ;;  %v1760_v39 = vld [vmem:[#allocation5 + $0xc4] sm:$0xf0]  ;;  %v1743_v40 = vld [vmem:[#allocation5 + $0x44] sm:$0xf]  ;;  %v1256_v44 = vor.u32 %v1744_v36, %v1255_v35 }
  0x25   :  { %378 = vmatpush.bf16.msra.mxu3 %v1340_v25  ;;  %v1257_v41 = vld [vmem:[#allocation5 + $0x48] sm:$0xf0]  ;;  %v1759_v42 = vld [vmem:[#allocation5 + $0xc4] sm:$0xf]  ;;  %v1320_v45 = vor.u32 %v1760_v39, %v1319_v37  ;;  %v1247_v47 = vld [vmem:[#allocation5 + $0x30] sm:$0xf] }
  0x26   :  { %v1321_v43 = vld [vmem:[#allocation5 + $0xc8] sm:$0xf0]  ;;  %337 = vmatpush.bf16.msra.mxu0 %v1264_v29  ;;  %v1260_v46 = vor.u32 %v1743_v40, %v1257_v41  ;;  %v1742_v48 = vld [vmem:[#allocation5 + $0x34] sm:$0xf0]  ;;  %v1311_v49 = vld [vmem:[#allocation5 + $0xb0] sm:$0xf] }
  0x27   :  { %351 = vmatpush.bf16.msra.mxu1 %v1328_v33  ;;  %v1324_v50 = vor.u32 %v1759_v42, %v1321_v43  ;;  %v1758_v51 = vld [vmem:[#allocation5 + $0xb4] sm:$0xf0]  ;;  %v1741_v52 = vld [vmem:[#allocation5 + $0x34] sm:$0xf]  ;;  %v1249_v53 = vld [vmem:[#allocation5 + $0x38] sm:$0xf0]  ;;  %v1248_v56 = vor.u32 %v1742_v48, %v1247_v47 }
  0x28   :  { %365 = vmatpush.bf16.msra.mxu2 %v1268_v34  ;;  %v1757_v54 = vld [vmem:[#allocation5 + $0xb4] sm:$0xf]  ;;  %v1313_v55 = vld [vmem:[#allocation5 + $0xb8] sm:$0xf0]  ;;  %v1312_v57 = vor.u32 %v1758_v51, %v1311_v49  ;;  %v1252_v58 = vor.u32 %v1741_v52, %v1249_v53  ;;  %v1239_v59 = vld [vmem:[#allocation5 + $0x20] sm:$0xf] }
  0x29   :  { %379 = vmatpush.bf16.msra.mxu3 %v1332_v38  ;;  %v1740_v60 = vld [vmem:[#allocation5 + $0x24] sm:$0xf0]  ;;  %v1303_v61 = vld [vmem:[#allocation5 + $0xa0] sm:$0xf]  ;;  %v1316_v62 = vor.u32 %v1757_v54, %v1313_v55  ;;  %v1739_v0 = vld [vmem:[#allocation5 + $0x24] sm:$0xf] }
  0x2a   :  { %338 = vmatpush.bf16.msra.mxu0 %v1256_v44  ;;  %v1756_v63 = vld [vmem:[#allocation5 + $0xa4] sm:$0xf0]  ;;  %v1241_v1 = vld [vmem:[#allocation5 + $0x28] sm:$0xf0]  ;;  %v1755_v2 = vld [vmem:[#allocation5 + $0xa4] sm:$0xf]  ;;  %v1240_v4 = vor.u32 %v1740_v60, %v1239_v59 }
  0x2b   :  { %352 = vmatpush.bf16.msra.mxu1 %v1320_v45  ;;  %v1305_v3 = vld [vmem:[#allocation5 + $0xa8] sm:$0xf0]  ;;  %v1304_v5 = vor.u32 %v1756_v63, %v1303_v61  ;;  %v1244_v6 = vor.u32 %v1739_v0, %v1241_v1  ;;  %v1231_v7 = vld [vmem:[#allocation5 + $0x10] sm:$0xf]  ;;  %v1738_v8 = vld [vmem:[#allocation5 + $0x14] sm:$0xf0] }
  0x2c   :  { %366 = vmatpush.bf16.msra.mxu2 %v1260_v46  ;;  %v1295_v9 = vld [vmem:[#allocation5 + $0x90] sm:$0xf]  ;;  %v1308_v10 = vor.u32 %v1755_v2, %v1305_v3  ;;  %v1754_v11 = vld [vmem:[#allocation5 + $0x94] sm:$0xf0]  ;;  %v1737_v12 = vld [vmem:[#allocation5 + $0x14] sm:$0xf]  ;;  %v1232_v16 = vor.u32 %v1738_v8, %v1231_v7 }
  0x2d   :  { %380 = vmatpush.bf16.msra.mxu3 %v1324_v50  ;;  %v1233_v13 = vld [vmem:[#allocation5 + $0x18] sm:$0xf0]  ;;  %v1753_v14 = vld [vmem:[#allocation5 + $0x94] sm:$0xf]  ;;  %v1223_v17 = vld [vmem:[#allocation5] sm:$0xf]  ;;  %v1296_v19 = vor.u32 %v1754_v11, %v1295_v9 }
  0x2e   :  { %339 = vmatpush.bf16.msra.mxu0 %v1248_v56  ;;  %v1297_v15 = vld [vmem:[#allocation5 + $0x98] sm:$0xf0]  ;;  %v1736_v18 = vld [vmem:[#allocation5 + $0x4] sm:$0xf0]  ;;  %v1236_v20 = vor.u32 %v1737_v12, %v1233_v13  ;;  %v1287_v21 = vld [vmem:[#allocation5 + $0x80] sm:$0xf] }
  0x2f   :  { %353 = vmatpush.bf16.msra.mxu1 %v1312_v57  ;;  %v1752_v22 = vld [vmem:[#allocation5 + $0x84] sm:$0xf0]  ;;  %v1735_v23 = vld [vmem:[#allocation5 + $0x4] sm:$0xf]  ;;  %v1300_v24 = vor.u32 %v1753_v14, %v1297_v15  ;;  %v1225_v25 = vld [vmem:[#allocation5 + $0x8] sm:$0xf0]  ;;  %v1224_v31 = vor.u32 %v1736_v18, %v1223_v17 }
  0x30   :  { %367 = vmatpush.bf16.msra.mxu2 %v1252_v58  ;;  %v1751_v26 = vld [vmem:[#allocation5 + $0x84] sm:$0xf]  ;;  %v1289_v27 = vld [vmem:[#allocation5 + $0x88] sm:$0xf0]  ;;  %v1215_v28 = vld [vmem:[#allocation2] sm:$0xf]  ;;  %v1288_v35 = vor.u32 %v1752_v22, %v1287_v21  ;;  %v1228_v36 = vor.u32 %v1735_v23, %v1225_v25 }
  0x31   :  { %381 = vmatpush.bf16.msra.mxu3 %v1316_v62  ;;  %v1407_v29 = vld [vmem:[#allocation8 + $0x70] sm:$0xf]  ;;  %v1782_v30 = vld [vmem:[#allocation8 + $0x74] sm:$0xf0]  ;;  %v1781_v33 = vld [vmem:[#allocation8 + $0x74] sm:$0xf]  ;;  %v1292_v39 = vor.u32 %v1751_v26, %v1289_v27 }
  0x32   :  { %340 = vmatpush.bf16.msra.mxu0 %v1240_v4  ;;  %v1734_v32 = vld [vmem:[#allocation2 + $0x4] sm:$0xf0]  ;;  %v1409_v34 = vld [vmem:[#allocation8 + $0x78] sm:$0xf0]  ;;  %v1733_v37 = vld [vmem:[#allocation2 + $0x4] sm:$0xf]  ;;  %v1408_v40 = vor.u32 %v1782_v30, %v1407_v29 }
  0x33   :  { %354 = vmatpush.bf16.msra.mxu1 %v1304_v5  ;;  %v1217_v38 = vld [vmem:[#allocation2 + $0x8] sm:$0xf0]  ;;  %v1399_v41 = vld [vmem:[#allocation8 + $0x60] sm:$0xf]  ;;  %v1471_v42 = vld [vmem:[#allocation8 + $0xf0] sm:$0xf]  ;;  %v1216_v44 = vor.u32 %v1734_v32, %v1215_v28  ;;  %v1412_v45 = vor.u32 %v1781_v33, %v1409_v34 }
  0x34   :  { %368 = vmatpush.bf16.msra.mxu2 %v1244_v6  ;;  %v1798_v43 = vld [vmem:[#allocation8 + $0xf4] sm:$0xf0]  ;;  %v1780_v46 = vld [vmem:[#allocation8 + $0x64] sm:$0xf0]  ;;  %v1797_v47 = vld [vmem:[#allocation8 + $0xf4] sm:$0xf]  ;;  %v1220_v49 = vor.u32 %v1733_v37, %v1217_v38 }
  0x35   :  { %382 = vmatpush.bf16.msra.mxu3 %v1308_v10  ;;  %v1473_v48 = vld [vmem:[#allocation8 + $0xf8] sm:$0xf0]  ;;  %v1779_v50 = vld [vmem:[#allocation8 + $0x64] sm:$0xf]  ;;  %v1401_v51 = vld [vmem:[#allocation8 + $0x68] sm:$0xf0]  ;;  %v1472_v52 = vor.u32 %v1798_v43, %v1471_v42  ;;  %v1400_v53 = vor.u32 %v1780_v46, %v1399_v41 }
  0x36   :  { %341 = vmatpush.bf16.msra.mxu0 %v1232_v16  ;;  %v1476_v54 = vor.u32 %v1797_v47, %v1473_v48  ;;  %v1404_v55 = vor.u32 %v1779_v50, %v1401_v51  ;;  %v1391_v56 = vld [vmem:[#allocation8 + $0x50] sm:$0xf]  ;;  %v1778_v57 = vld [vmem:[#allocation8 + $0x54] sm:$0xf0]  ;;  %v1777_v58 = vld [vmem:[#allocation8 + $0x54] sm:$0xf] }
  0x37   :  { %355 = vmatpush.bf16.msra.mxu1 %v1296_v19  ;;  %v1393_v59 = vld [vmem:[#allocation8 + $0x58] sm:$0xf0]  ;;  %v1392_v60 = vor.u32 %v1778_v57, %v1391_v56  ;;  %v1463_v62 = vld [vmem:[#allocation8 + $0xe0] sm:$0xf]  ;;  %v1796_v63 = vld [vmem:[#allocation8 + $0xe4] sm:$0xf0] }
  0x38   :  { %369 = vmatpush.bf16.msra.mxu2 %v1236_v20  ;;  %v1396_v61 = vor.u32 %v1777_v58, %v1393_v59  ;;  %v1795_v0 = vld [vmem:[#allocation8 + $0xe4] sm:$0xf]  ;;  %v1464_v1 = vor.u32 %v1796_v63, %v1463_v62  ;;  %v1465_v2 = vld [vmem:[#allocation8 + $0xe8] sm:$0xf0]  ;;  %v1383_v4 = vld [vmem:[#allocation8 + $0x40] sm:$0xf] }
  0x39   :  { %383 = vmatpush.bf16.msra.mxu3 %v1300_v24  ;;  %v1468_v3 = vor.u32 %v1795_v0, %v1465_v2  ;;  %v1776_v5 = vld [vmem:[#allocation8 + $0x44] sm:$0xf0]  ;;  %v1775_v6 = vld [vmem:[#allocation8 + $0x44] sm:$0xf]  ;;  %v1385_v8 = vld [vmem:[#allocation8 + $0x48] sm:$0xf0] }
  0x3a   :  { %342 = vmatpush.bf16.msra.mxu0 %v1224_v31  ;;  %v1384_v7 = vor.u32 %v1776_v5, %v1383_v4  ;;  %v1388_v9 = vor.u32 %v1775_v6, %v1385_v8  ;;  %v1455_v10 = vld [vmem:[#allocation8 + $0xd0] sm:$0xf]  ;;  %v1794_v11 = vld [vmem:[#allocation8 + $0xd4] sm:$0xf0]  ;;  %v1793_v12 = vld [vmem:[#allocation8 + $0xd4] sm:$0xf] }
  0x3b   :  { %356 = vmatpush.bf16.msra.mxu1 %v1288_v35  ;;  %v1456_v13 = vor.u32 %v1794_v11, %v1455_v10  ;;  %v1457_v14 = vld [vmem:[#allocation8 + $0xd8] sm:$0xf0]  ;;  %v1375_v16 = vld [vmem:[#allocation8 + $0x30] sm:$0xf]  ;;  %v1774_v17 = vld [vmem:[#allocation8 + $0x34] sm:$0xf0] }
  0x3c   :  { %370 = vmatpush.bf16.msra.mxu2 %v1228_v36  ;;  %v1460_v15 = vor.u32 %v1793_v12, %v1457_v14  ;;  %v1773_v18 = vld [vmem:[#allocation8 + $0x34] sm:$0xf]  ;;  %v1376_v19 = vor.u32 %v1774_v17, %v1375_v16  ;;  %v1377_v20 = vld [vmem:[#allocation8 + $0x38] sm:$0xf0]  ;;  %v1447_v22 = vld [vmem:[#allocation8 + $0xc0] sm:$0xf] }
  0x3d   :  { %384 = vmatpush.bf16.msra.mxu3 %v1292_v39  ;;  %343 = vmatmul.bf16.vlgmr.msra.gmra.mxu0 %v1216_v44  ;;  %v1380_v21 = vor.u32 %v1773_v18, %v1377_v20  ;;  %v1792_v23 = vld [vmem:[#allocation8 + $0xc4] sm:$0xf0]  ;;  %v1791_v24 = vld [vmem:[#allocation8 + $0xc4] sm:$0xf]  ;;  %v1449_v26 = vld [vmem:[#allocation8 + $0xc8] sm:$0xf0] }
  0x3e   :  { %595 = vmatpush.bf16.msrb.mxu0 %v1408_v40  ;;  %357 = vmatmul.bf16.vlgmr.msra.gmra.mxu1 %v1220_v49  ;;  %v1448_v25 = vor.u32 %v1792_v23, %v1447_v22  ;;  %v1452_v27 = vor.u32 %v1791_v24, %v1449_v26  ;;  %v1367_v28 = vld [vmem:[#allocation8 + $0x20] sm:$0xf]  ;;  %v1772_v29 = vld [vmem:[#allocation8 + $0x24] sm:$0xf0]  ;;  %v1771_v30 = vld [vmem:[#allocation8 + $0x24] sm:$0xf] }
  0x3f   :  { %371 = vmatmul.bf16.vlgmr.msra.gmra.mxu2 %v1216_v44  ;;  %609 = vmatpush.bf16.msrb.mxu1 %v1472_v52  ;;  %v1368_v31 = vor.u32 %v1772_v29, %v1367_v28  ;;  %v1369_v32 = vld [vmem:[#allocation8 + $0x28] sm:$0xf0]  ;;  %v1439_v34 = vld [vmem:[#allocation8 + $0xb0] sm:$0xf]  ;;  %v1790_v35 = vld [vmem:[#allocation8 + $0xb4] sm:$0xf0] }
  0x40   :  { %623 = vmatpush.bf16.msrb.mxu2 %v1412_v45  ;;  %385 = vmatmul.bf16.vlgmr.msra.gmra.mxu3 %v1220_v49  ;;  %v1372_v33 = vor.u32 %v1771_v30, %v1369_v32  ;;  %v1789_v36 = vld [vmem:[#allocation8 + $0xb4] sm:$0xf]  ;;  %v1440_v37 = vor.u32 %v1790_v35, %v1439_v34  ;;  %v1441_v38 = vld [vmem:[#allocation8 + $0xb8] sm:$0xf0]  ;;  %v1359_v40 = vld [vmem:[#allocation8 + $0x10] sm:$0xf] }
  0x41   :  { %637 = vmatpush.bf16.msrb.mxu3 %v1476_v54  ;;  %v1444_v39 = vor.u32 %v1789_v36, %v1441_v38  ;;  %v1770_v41 = vld [vmem:[#allocation8 + $0x14] sm:$0xf0]  ;;  %v1769_v42 = vld [vmem:[#allocation8 + $0x14] sm:$0xf]  ;;  %v1361_v44 = vld [vmem:[#allocation8 + $0x18] sm:$0xf0] }
  0x42   :  { %596 = vmatpush.bf16.msrb.mxu0 %v1400_v53  ;;  %v1360_v43 = vor.u32 %v1770_v41, %v1359_v40  ;;  %v1364_v45 = vor.u32 %v1769_v42, %v1361_v44  ;;  %v1431_v46 = vld [vmem:[#allocation8 + $0xa0] sm:$0xf]  ;;  %v1788_v47 = vld [vmem:[#allocation8 + $0xa4] sm:$0xf0]  ;;  %v1787_v48 = vld [vmem:[#allocation8 + $0xa4] sm:$0xf] }
  0x43   :  { %610 = vmatpush.bf16.msrb.mxu1 %v1464_v1  ;;  %v1432_v49 = vor.u32 %v1788_v47, %v1431_v46  ;;  %v1433_v50 = vld [vmem:[#allocation8 + $0xa8] sm:$0xf0]  ;;  %v1351_v52 = vld [vmem:[#allocation8] sm:$0xf]  ;;  %v1768_v53 = vld [vmem:[#allocation8 + $0x4] sm:$0xf0] }
  0x44   :  { %624 = vmatpush.bf16.msrb.mxu2 %v1404_v55  ;;  %v1436_v51 = vor.u32 %v1787_v48, %v1433_v50  ;;  %v1767_v54 = vld [vmem:[#allocation8 + $0x4] sm:$0xf]  ;;  %v1352_v55 = vor.u32 %v1768_v53, %v1351_v52  ;;  %v1353_v56 = vld [vmem:[#allocation8 + $0x8] sm:$0xf0]  ;;  %v1423_v58 = vld [vmem:[#allocation8 + $0x90] sm:$0xf] }
  0x45   :  { %638 = vmatpush.bf16.msrb.mxu3 %v1468_v3  ;;  %v1356_v57 = vor.u32 %v1767_v54, %v1353_v56  ;;  %v1786_v59 = vld [vmem:[#allocation8 + $0x94] sm:$0xf0]  ;;  %v1425_v62 = vld [vmem:[#allocation8 + $0x98] sm:$0xf0]  ;;  %v1415_v0 = vld [vmem:[#allocation8 + $0x80] sm:$0xf] }
  0x46   :  { %597 = vmatpush.bf16.msrb.mxu0 %v1392_v60  ;;  %v1785_v60 = vld [vmem:[#allocation8 + $0x94] sm:$0xf]  ;;  %v1784_v1 = vld [vmem:[#allocation8 + $0x84] sm:$0xf0]  ;;  %v1783_v2 = vld [vmem:[#allocation8 + $0x84] sm:$0xf] }
  0x47   :  { %611 = vmatpush.bf16.msrb.mxu1 %v1456_v13  ;;  %v1428_v63 = vor.u32 %v1785_v60, %v1425_v62  ;;  %v1416_v3 = vor.u32 %v1784_v1, %v1415_v0  ;;  %v1417_v4 = vld [vmem:[#allocation8 + $0x88] sm:$0xf0]  ;;  %v159_v6 = vld [vmem:[#allocation7] sm:$0x3]  ;;  %v1814_v8 = vld [vmem:[#allocation10 + $0x74] sm:$0xf0] }
  0x48   :  { %625 = vmatpush.bf16.msrb.mxu2 %v1396_v61  ;;  %v1424_v61 = vor.u32 %v1786_v59, %v1423_v58  ;;  %v1420_v5 = vor.u32 %v1783_v2, %v1417_v4  ;;  %v1537_v11 = vld [vmem:[#allocation10 + $0x78] sm:$0xf0]  ;;  %v1527_v12 = vld [vmem:[#allocation10 + $0x60] sm:$0xf]  ;;  %v1812_v13 = vld [vmem:[#allocation10 + $0x64] sm:$0xf0] }
  0x49   :  { %639 = vmatpush.bf16.msrb.mxu3 %v1460_v15  ;;  %v1811_v15 = vld [vmem:[#allocation10 + $0x64] sm:$0xf]  ;;  %v1529_v16 = vld [vmem:[#allocation10 + $0x68] sm:$0xf0]  ;;  %v161_v17 = vperm.slane %v159_v6, 0  ;;  %v162_v23 = vperm.slane %v159_v6, 1 }
  0x4a   :  { %598 = vmatpush.bf16.msrb.mxu0 %v1384_v7  ;;  %v1535_v7 = vld [vmem:[#allocation10 + $0x70] sm:$0xf]  ;;  %v1830_v44 = vld [vmem:[#allocation10 + $0xf4] sm:$0xf0]  ;;  %v1601_v47 = vld [vmem:[#allocation10 + $0xf8] sm:$0xf0] }
  0x4b   :  { %612 = vmatpush.bf16.msrb.mxu1 %v1448_v25  ;;  %v1536_v10 = vor.u32 %v1814_v8, %v1535_v7  ;;  %v1519_v48 = vld [vmem:[#allocation10 + $0x50] sm:$0xf]  ;;  %v1809_v52 = vld [vmem:[#allocation10 + $0x54] sm:$0xf]  ;;  %v1521_v53 = vld [vmem:[#allocation10 + $0x58] sm:$0xf0] }
  0x4c   :  { %626 = vmatpush.bf16.msrb.mxu2 %v1388_v9  ;;  %v1813_v9 = vld [vmem:[#allocation10 + $0x74] sm:$0xf]  ;;  %v1591_v54 = vld [vmem:[#allocation10 + $0xe0] sm:$0xf]  ;;  %v1828_v56 = vld [vmem:[#allocation10 + $0xe4] sm:$0xf0] }
  0x4d   :  { %640 = vmatpush.bf16.msrb.mxu3 %v1452_v27  ;;  %v1540_v14 = vor.u32 %v1813_v9, %v1537_v11  ;;  %v1593_v58 = vld [vmem:[#allocation10 + $0xe8] sm:$0xf0]  ;;  %v1592_v59 = vor.u32 %v1828_v56, %v1591_v54  ;;  %v1808_v62 = vld [vmem:[#allocation10 + $0x44] sm:$0xf0]  ;;  %v1826_v4 = vld [vmem:[#allocation10 + $0xd4] sm:$0xf0] }
  0x4e   :  { %599 = vmatpush.bf16.msrb.mxu0 %v1376_v19  ;;  %v1528_v19 = vor.u32 %v1812_v13, %v1527_v12  ;;  %v1513_v1 = vld [vmem:[#allocation10 + $0x48] sm:$0xf0]  ;;  %v1585_v7 = vld [vmem:[#allocation10 + $0xd8] sm:$0xf0]  ;;  %v1503_v9 = vld [vmem:[#allocation10 + $0x30] sm:$0xf] }
  0x4f   :  { %613 = vmatpush.bf16.msrb.mxu1 %v1440_v37  ;;  %v1805_v11 = vld [vmem:[#allocation10 + $0x34] sm:$0xf]  ;;  %v1505_v13 = vld [vmem:[#allocation10 + $0x38] sm:$0xf0]  ;;  %s1197_s21 = sshll.u32 %s2199_s9, 4  ;;  %s2093_s22 = smov 256   ;;  %s1198_s21 = int_to_ptr.hbm [resolvable:$true] %s1197_s21 }
  0x50   :  { %627 = vmatpush.bf16.msrb.mxu2 %v1380_v21  ;;  %v1532_v21 = vor.u32 %v1811_v15, %v1529_v16  ;;  %v1575_v15 = vld [vmem:[#allocation10 + $0xc0] sm:$0xf]  ;;  %v1824_v16 = vld [vmem:[#allocation10 + $0xc4] sm:$0xf0]  ;;  %s2094_s1 = smov 16  }
  0x51   :  { %641 = vmatpush.bf16.msrb.mxu3 %v1444_v39 }
  0x52   :  { %600 = vmatpush.bf16.msrb.mxu0 %v1368_v31 }
  0x53   :  { %614 = vmatpush.bf16.msrb.mxu1 %v1432_v49  ;;  %v1810_v49 = vld [vmem:[#allocation10 + $0x54] sm:$0xf0] }
  0x54   :  { %628 = vmatpush.bf16.msrb.mxu2 %v1372_v33 }
  0x55   :  { %642 = vmatpush.bf16.msrb.mxu3 %v1436_v51  ;;  %v1520_v51 = vor.u32 %v1810_v49, %v1519_v48  ;;  %v1481_v49 = vld [vmem:[#allocation10 + $0x8] sm:$0xf0] }
  0x56   :  { %601 = vmatpush.bf16.msrb.mxu0 %v1360_v43  ;;  %v1599_v43 = vld [vmem:[#allocation10 + $0xf0] sm:$0xf] }
  0x57   :  { %615 = vmatpush.bf16.msrb.mxu1 %v1424_v61  ;;  %v1600_v46 = vor.u32 %v1830_v44, %v1599_v43  ;;  %v1511_v61 = vld [vmem:[#allocation10 + $0x40] sm:$0xf]  ;;  %v1561_v43 = vld [vmem:[#allocation10 + $0xa8] sm:$0xf0] }
  0x58   :  { %629 = vmatpush.bf16.msrb.mxu2 %v1364_v45  ;;  %v1829_v45 = vld [vmem:[#allocation10 + $0xf4] sm:$0xf]  ;;  %v1512_v0 = vor.u32 %v1808_v62, %v1511_v61  ;;  %v1545_v61 = vld [vmem:[#allocation10 + $0x88] sm:$0xf0] }
  0x59   :  { %643 = vmatpush.bf16.msrb.mxu3 %v1428_v63  ;;  %v1604_v50 = vor.u32 %v1829_v45, %v1601_v47  ;;  %v1807_v63 = vld [vmem:[#allocation10 + $0x44] sm:$0xf]  ;;  %v1479_v45 = vld [vmem:[#allocation10] sm:$0xf] }
  0x5a   :  { %602 = vmatpush.bf16.msrb.mxu0 %v1352_v55  ;;  %v1524_v55 = vor.u32 %v1809_v52, %v1521_v53  ;;  %v1516_v2 = vor.u32 %v1807_v63, %v1513_v1  ;;  %v1799_v47 = vld [vmem:[#allocation10 + $0x4] sm:$0xf]  ;;  %v1818_v52 = vld [vmem:[#allocation10 + $0x94] sm:$0xf0]  ;;  %v1817_v53 = vld [vmem:[#allocation10 + $0x94] sm:$0xf] }
  0x5b   :  { %616 = vmatpush.bf16.msrb.mxu1 %v1416_v3  ;;  %v1583_v3 = vld [vmem:[#allocation10 + $0xd0] sm:$0xf]  ;;  %v1846_v1 = vld [vmem:[#allocation11 + $0x74] sm:$0xf0] }
  0x5c   :  { %630 = vmatpush.bf16.msrb.mxu2 %v1356_v57  ;;  %v1827_v57 = vld [vmem:[#allocation10 + $0xe4] sm:$0xf]  ;;  %v1584_v6 = vor.u32 %v1826_v4, %v1583_v3  ;;  %v1665_v4 = vld [vmem:[#allocation11 + $0x78] sm:$0xf0] }
  0x5d   :  { %644 = vmatpush.bf16.msrb.mxu3 %v1420_v5  ;;  %v1596_v60 = vor.u32 %v1827_v57, %v1593_v58  ;;  %v1825_v5 = vld [vmem:[#allocation10 + $0xd4] sm:$0xf]  ;;  %v1543_v57 = vld [vmem:[#allocation10 + $0x80] sm:$0xf]  ;;  %v1816_v58 = vld [vmem:[#allocation10 + $0x84] sm:$0xf0] }
  0x5e   :  { %855 = vmatpush.bf16.msra.mxu0 %v1536_v10  ;;  %v1588_v8 = vor.u32 %v1825_v5, %v1585_v7  ;;  %v1806_v10 = vld [vmem:[#allocation10 + $0x34] sm:$0xf0]  ;;  %v1655_v5 = vld [vmem:[#allocation11 + $0x60] sm:$0xf] }
  0x5f   :  { %869 = vmatpush.bf16.msra.mxu1 %v1600_v46  ;;  %v1504_v12 = vor.u32 %v1806_v10, %v1503_v9  ;;  %v1800_v46 = vld [vmem:[#allocation10 + $0x4] sm:$0xf0]  ;;  %v1657_v9 = vld [vmem:[#allocation11 + $0x68] sm:$0xf0] }
  0x60   :  { %883 = vmatpush.bf16.msra.mxu2 %v1540_v14  ;;  %v1508_v14 = vor.u32 %v1805_v11, %v1505_v13  ;;  %v1480_v48 = vor.u32 %v1800_v46, %v1479_v45  ;;  %v429_v10 = vld [vmem:[%s2194_s4] sm:$0x3]  ;;  %v1649_v46 = vld [vmem:[#allocation11 + $0x58] sm:$0xf0] }
  0x61   :  { %897 = vmatpush.bf16.msra.mxu3 %v1604_v50  ;;  %v1484_v50 = vor.u32 %v1799_v47, %v1481_v49  ;;  %v431_v13 = vperm.slane %v429_v10, 0  ;;  %v1719_v47 = vld [vmem:[#allocation11 + $0xe0] sm:$0xf] }
  0x62   :  { %856 = vmatpush.bf16.msra.mxu0 %v1528_v19  ;;  %v1577_v19 = vld [vmem:[#allocation10 + $0xc8] sm:$0xf0] }
  0x63   :  { %870 = vmatpush.bf16.msra.mxu1 %v1592_v59  ;;  %v1815_v59 = vld [vmem:[#allocation10 + $0x84] sm:$0xf] }
  0x64   :  { %884 = vmatpush.bf16.msra.mxu2 %v1532_v21  ;;  %v1495_v21 = vld [vmem:[#allocation10 + $0x20] sm:$0xf]  ;;  %v1548_v62 = vor.u32 %v1815_v59, %v1545_v61  ;;  %v1858_v61 = vld [vmem:[#allocation11 + $0xd4] sm:$0xf0] }
  0x65   :  { %898 = vmatpush.bf16.msra.mxu3 %v1596_v60  ;;  %v1544_v60 = vor.u32 %v1816_v58, %v1543_v57  ;;  %v1641_v58 = vld [vmem:[#allocation11 + $0x48] sm:$0xf0] }
  0x66   :  { %857 = vmatpush.bf16.msra.mxu0 %v1520_v51  ;;  %v1551_v51 = vld [vmem:[#allocation10 + $0x90] sm:$0xf] }
  0x67   :  { %871 = vmatpush.bf16.msra.mxu1 %v1584_v6  ;;  %v1552_v54 = vor.u32 %v1818_v52, %v1551_v51  ;;  %v1844_v6 = vld [vmem:[#allocation11 + $0x64] sm:$0xf0]  ;;  %v1859_v51 = vld [vmem:[#allocation11 + $0xe4] sm:$0xf]  ;;  %v1721_v52 = vld [vmem:[#allocation11 + $0xe8] sm:$0xf0] }
  0x68   :  { %885 = vmatpush.bf16.msra.mxu2 %v1524_v55  ;;  %v1553_v55 = vld [vmem:[#allocation10 + $0x98] sm:$0xf0]  ;;  %v1656_v11 = vor.u32 %v1844_v6, %v1655_v5 }
  0x69   :  { %899 = vmatpush.bf16.msra.mxu3 %v1588_v8  ;;  %v1556_v56 = vor.u32 %v1817_v53, %v1553_v55  ;;  %v1843_v8 = vld [vmem:[#allocation11 + $0x64] sm:$0xf]  ;;  %v1724_v53 = vor.u32 %v1859_v51, %v1721_v52  ;;  %v1840_v55 = vld [vmem:[#allocation11 + $0x44] sm:$0xf0]  ;;  %v1633_v6 = vld [vmem:[#allocation11 + $0x38] sm:$0xf0] }
  0x6a   :  { %858 = vmatpush.bf16.msra.mxu0 %v1512_v0  ;;  %v1663_v0 = vld [vmem:[#allocation11 + $0x70] sm:$0xf]  ;;  %v1848_v51 = vld [vmem:[#allocation11 + $0x84] sm:$0xf0]  ;;  %v1847_v52 = vld [vmem:[#allocation11 + $0x84] sm:$0xf] }
  0x6b   :  { %v1664_v3 = vor.u32 %v1846_v1, %v1663_v0  ;;  %v1713_v0 = vld [vmem:[#allocation11 + $0xd8] sm:$0xf0] }
  0x6c   :  { %886 = vmatpush.bf16.msra.mxu2 %v1516_v2  ;;  %v1845_v2 = vld [vmem:[#allocation11 + $0x74] sm:$0xf] }
  0x6d   :  { %v1668_v7 = vor.u32 %v1845_v2, %v1665_v4  ;;  %v1631_v2 = vld [vmem:[#allocation11 + $0x30] sm:$0xf]  ;;  %v1837_v4 = vld [vmem:[#allocation11 + $0x34] sm:$0xf] }
  0x6e   :  { %859 = vmatpush.bf16.msra.mxu0 %v1504_v12  ;;  %v1660_v12 = vor.u32 %v1843_v8, %v1657_v9  ;;  %v1703_v8 = vld [vmem:[#allocation11 + $0xc0] sm:$0xf]  ;;  %v1856_v9 = vld [vmem:[#allocation11 + $0xc4] sm:$0xf0] }
  0x70   :  { %887 = vmatpush.bf16.msra.mxu2 %v1508_v14 }
  0xba   :  { %v344_v18 = vpop.f32.mrf.mxu0 }
  0xbb   :  { %v358_v20 = vpop.f32.mrf.mxu1  ;;  %v345_v22 = vadd.f32 %v344_v18, %v161_v17  ;;  %v1576_v18 = vor.u32 %v1824_v16, %v1575_v15 }
  0xbd   :  { %v359_v25 = vadd.f32 %v358_v20, %v345_v22  ;;  %v1804_v22 = vld [vmem:[#allocation10 + $0x24] sm:$0xf0]  ;;  %872 = vmatpush.bf16.msra.mxu1 %v1576_v18 }
  0xbf   :  { %1874 = vtanh.f32 %v359_v25  ;;  %v1497_v25 = vld [vmem:[#allocation10 + $0x28] sm:$0xf0] }
  0xc2   :  { %v372_v24 = vpop.f32.mrf.mxu2  ;;  %v346_v27 = vpop.f32.mrf.mxu0 }
  0xc3   :  { %v386_v26 = vpop.f32.mrf.mxu3  ;;  %v347_v28 = vadd.f32 %v346_v27, %v161_v17  ;;  %v360_v29 = vpop.f32.mrf.mxu1  ;;  %v373_v30 = vadd.f32 %v372_v24, %v162_v23  ;;  %v1823_v17 = vld [vmem:[#allocation10 + $0xc4] sm:$0xf]  ;;  %v1496_v24 = vor.u32 %v1804_v22, %v1495_v21  ;;  %v1567_v27 = vld [vmem:[#allocation10 + $0xb0] sm:$0xf] }
  0xc4   :  { %v1580_v20 = vor.u32 %v1823_v17, %v1577_v19  ;;  %v432_v19 = vperm.slane %v429_v10, 1  ;;  %v1855_v10 = vld [vmem:[#allocation11 + $0xc4] sm:$0xf] }
  0xc5   :  { %v361_v31 = vadd.f32 %v360_v29, %v347_v28  ;;  %v387_v32 = vadd.f32 %v386_v26, %v373_v30  ;;  %v1875_v36 = vpop.eup %1874  ;;  %v1822_v28 = vld [vmem:[#allocation10 + $0xb4] sm:$0xf0]  ;;  %v1821_v29 = vld [vmem:[#allocation10 + $0xb4] sm:$0xf]  ;;  %860 = vmatpush.bf16.msra.mxu0 %v1496_v24 }
  0xc6   :  { %900 = vmatpush.bf16.msra.mxu3 %v1580_v20  ;;  %v1568_v30 = vor.u32 %v1822_v28, %v1567_v27 }
  0xc7   :  { %1876 = vtanh.f32 %v361_v31  ;;  %v1569_v31 = vld [vmem:[#allocation10 + $0xb8] sm:$0xf0] }
  0xc8   :  { %1878 = vtanh.f32 %v387_v32  ;;  %v1572_v32 = vor.u32 %v1821_v29, %v1569_v31  ;;  %873 = vmatpush.bf16.msra.mxu1 %v1568_v30 }
  0xca   :  { %v374_v33 = vpop.f32.mrf.mxu2  ;;  %901 = vmatpush.bf16.msra.mxu3 %v1572_v32 }
  0xcb   :  { %v375_v34 = vadd.f32 %v374_v33, %v162_v23  ;;  %v388_v35 = vpop.f32.mrf.mxu3  ;;  %v1803_v23 = vld [vmem:[#allocation10 + $0x24] sm:$0xf]  ;;  %v1487_v33 = vld [vmem:[#allocation10 + $0x10] sm:$0xf] }
  0xcc   :  { %v1500_v26 = vor.u32 %v1803_v23, %v1497_v25 }
  0xcd   :  { %v389_v37 = vadd.f32 %v388_v35, %v375_v34  ;;  %v1877_v38 = vpop.eup %1876  ;;  %v1802_v34 = vld [vmem:[#allocation10 + $0x14] sm:$0xf0]  ;;  %v1801_v35 = vld [vmem:[#allocation10 + $0x14] sm:$0xf] }
  0xce   :  { %v395_v39 = vpack.c.bf16 %v1877_v38, %v1875_v36  ;;  %v1879_v40 = vpop.eup %1878  ;;  %888 = vmatpush.bf16.msra.mxu2 %v1500_v26  ;;  %v1488_v36 = vor.u32 %v1802_v34, %v1487_v33 }
  0xcf   :  { %1880 = vtanh.f32 %v389_v37  ;;  %v1489_v37 = vld [vmem:[#allocation10 + $0x18] sm:$0xf0] }
  0xd0   :  { %603 = vmatmul.bf16.vlgmr.msrb.gmra.mxu0 %v395_v39  ;;  %631 = vmatmul.bf16.vlgmr.msrb.gmra.mxu2 %v395_v39  ;;  %v1492_v38 = vor.u32 %v1801_v35, %v1489_v37  ;;  %v1559_v39 = vld [vmem:[#allocation10 + $0xa0] sm:$0xf]  ;;  %v1862_v37 = vld [vmem:[#allocation11 + $0xf4] sm:$0xf0] }
  0xd1   :  { %861 = vmatpush.bf16.msra.mxu0 %v1488_v36  ;;  %v1727_v36 = vld [vmem:[#allocation11 + $0xf0] sm:$0xf] }
  0xd2   :  { %889 = vmatpush.bf16.msra.mxu2 %v1492_v38  ;;  %v1861_v38 = vld [vmem:[#allocation11 + $0xf4] sm:$0xf] }
  0xd5   :  { %v1881_v41 = vpop.eup %1880  ;;  %862 = vmatpush.bf16.msra.mxu0 %v1480_v48  ;;  %v1860_v48 = vld [vmem:[#allocation11 + $0xe4] sm:$0xf0] }
  0xd6   :  { %v396_v42 = vpack.c.bf16 %v1881_v41, %v1879_v40  ;;  %v1820_v40 = vld [vmem:[#allocation10 + $0xa4] sm:$0xf0]  ;;  %v1819_v41 = vld [vmem:[#allocation10 + $0xa4] sm:$0xf]  ;;  %890 = vmatpush.bf16.msra.mxu2 %v1484_v50  ;;  %v1720_v50 = vor.u32 %v1860_v48, %v1719_v47  ;;  %v1681_v48 = vld [vmem:[#allocation11 + $0x98] sm:$0xf0] }
  0xd7   :  { %v1564_v44 = vor.u32 %v1819_v41, %v1561_v43  ;;  %v1842_v43 = vld [vmem:[#allocation11 + $0x54] sm:$0xf0] }
  0xd8   :  { %617 = vmatmul.bf16.vlgmr.msrb.gmra.mxu1 %v396_v42  ;;  %645 = vmatmul.bf16.vlgmr.msrb.gmra.mxu3 %v396_v42  ;;  %v1560_v42 = vor.u32 %v1820_v40, %v1559_v39  ;;  %v1728_v39 = vor.u32 %v1862_v37, %v1727_v36  ;;  %v1729_v40 = vld [vmem:[#allocation11 + $0xf8] sm:$0xf0]  ;;  %v1689_v36 = vld [vmem:[#allocation11 + $0xa8] sm:$0xf0] }
  0xd9   :  { %902 = vmatpush.bf16.msra.mxu3 %v1564_v44  ;;  %1115 = vmatpush.bf16.msrb.mxu0 %v1664_v3  ;;  %v1732_v41 = vor.u32 %v1861_v38, %v1729_v40  ;;  %v1841_v44 = vld [vmem:[#allocation11 + $0x54] sm:$0xf]  ;;  %v1838_v3 = vld [vmem:[#allocation11 + $0x34] sm:$0xf0]  ;;  %v1607_v38 = vld [vmem:[#allocation11] sm:$0xf] }
  0xda   :  { %874 = vmatpush.bf16.msra.mxu1 %v1560_v42  ;;  %1143 = vmatpush.bf16.msrb.mxu2 %v1668_v7  ;;  %v1647_v42 = vld [vmem:[#allocation11 + $0x50] sm:$0xf]  ;;  %v1652_v49 = vor.u32 %v1841_v44, %v1649_v46  ;;  %v1632_v5 = vor.u32 %v1838_v3, %v1631_v2  ;;  %v1636_v7 = vor.u32 %v1837_v4, %v1633_v6  ;;  %v1831_v40 = vld [vmem:[#allocation11 + $0x4] sm:$0xf]  ;;  %v1849_v46 = vld [vmem:[#allocation11 + $0x94] sm:$0xf] }
  0xdb   :  { %v1648_v45 = vor.u32 %v1842_v43, %v1647_v42  ;;  %v1609_v42 = vld [vmem:[#allocation11 + $0x8] sm:$0xf0]  ;;  %v1679_v44 = vld [vmem:[#allocation11 + $0x90] sm:$0xf] }
  0xdc   :  { %v1612_v43 = vor.u32 %v1831_v40, %v1609_v42 }
  0xdd   :  { %903 = vmatpush.bf16.msra.mxu3 %v1556_v56  ;;  %1116 = vmatpush.bf16.msrb.mxu0 %v1656_v11  ;;  %v1839_v56 = vld [vmem:[#allocation11 + $0x44] sm:$0xf]  ;;  %v1704_v11 = vor.u32 %v1856_v9, %v1703_v8 }
  0xde   :  { %875 = vmatpush.bf16.msra.mxu1 %v1552_v54  ;;  %1144 = vmatpush.bf16.msrb.mxu2 %v1660_v12  ;;  %v1639_v54 = vld [vmem:[#allocation11 + $0x40] sm:$0xf]  ;;  %v1644_v59 = vor.u32 %v1839_v56, %v1641_v58  ;;  %v1705_v12 = vld [vmem:[#allocation11 + $0xc8] sm:$0xf0] }
  0xdf   :  { %v1640_v57 = vor.u32 %v1840_v55, %v1639_v54  ;;  %v1673_v54 = vld [vmem:[#allocation11 + $0x88] sm:$0xf0] }
  0xe0   :  { %v1676_v55 = vor.u32 %v1847_v52, %v1673_v54 }
  0xe1   :  { %904 = vmatpush.bf16.msra.mxu3 %v1548_v62  ;;  %1117 = vmatpush.bf16.msrb.mxu0 %v1648_v45  ;;  %v1857_v62 = vld [vmem:[#allocation11 + $0xd4] sm:$0xf]  ;;  %v1850_v45 = vld [vmem:[#allocation11 + $0x94] sm:$0xf0] }
  0xe2   :  { %876 = vmatpush.bf16.msra.mxu1 %v1544_v60  ;;  %1145 = vmatpush.bf16.msrb.mxu2 %v1652_v49  ;;  %v1711_v60 = vld [vmem:[#allocation11 + $0xd0] sm:$0xf]  ;;  %v1716_v1 = vor.u32 %v1857_v62, %v1713_v0  ;;  %v1680_v47 = vor.u32 %v1850_v45, %v1679_v44  ;;  %v1684_v49 = vor.u32 %v1849_v46, %v1681_v48 }
  0xe5   :  { %1157 = vmatpush.bf16.msrb.mxu3 %v1732_v41  ;;  %1118 = vmatpush.bf16.msrb.mxu0 %v1640_v57  ;;  %v689_v57 = vld [vmem:[%s2196_s6] sm:$0x3] }
  0xe6   :  { %1129 = vmatpush.bf16.msrb.mxu1 %v1728_v39  ;;  %1146 = vmatpush.bf16.msrb.mxu2 %v1644_v59  ;;  %v1832_v39 = vld [vmem:[#allocation11 + $0x4] sm:$0xf0]  ;;  %v691_v58 = vperm.slane %v689_v57, 0  ;;  %v692_v0 = vperm.slane %v689_v57, 1 }
  0xe7   :  { %v1608_v41 = vor.u32 %v1832_v39, %v1607_v38 }
  0xe9   :  { %1158 = vmatpush.bf16.msrb.mxu3 %v1724_v53  ;;  %1119 = vmatpush.bf16.msrb.mxu0 %v1632_v5 }
  0xea   :  { %1130 = vmatpush.bf16.msrb.mxu1 %v1720_v50  ;;  %1147 = vmatpush.bf16.msrb.mxu2 %v1636_v7  ;;  %v1671_v50 = vld [vmem:[#allocation11 + $0x80] sm:$0xf] }
  0xeb   :  { %v1672_v53 = vor.u32 %v1848_v51, %v1671_v50 }
  0xed   :  { %1159 = vmatpush.bf16.msrb.mxu3 %v1716_v1 }
 0x14d   :  { %v604_v63 = vpop.f32.mrf.mxu0 }
 0x14e   :  { %v605_v16 = vadd.f32 %v604_v63, %v431_v13  ;;  %v1712_v63 = vor.u32 %v1858_v61, %v1711_v60 }
 0x150   :  { %1131 = vmatpush.bf16.msrb.mxu1 %v1712_v63 }
 0x153   :  { %v632_v15 = vpop.f32.mrf.mxu2 }
 0x154   :  { %v633_v24 = vadd.f32 %v632_v15, %v432_v19  ;;  %v1836_v15 = vld [vmem:[#allocation11 + $0x24] sm:$0xf0]  ;;  %1132 = vmatpush.bf16.msrb.mxu1 %v1704_v11 }
 0x155   :  { %v618_v14 = vpop.f32.mrf.mxu1  ;;  %v606_v17 = vpop.f32.mrf.mxu0 }
 0x156   :  { %v619_v18 = vadd.f32 %v618_v14, %v605_v16  ;;  %v607_v21 = vadd.f32 %v606_v17, %v431_v13  ;;  %v1708_v13 = vor.u32 %v1855_v10, %v1705_v12  ;;  %v1623_v14 = vld [vmem:[#allocation11 + $0x20] sm:$0xf]  ;;  %v1835_v16 = vld [vmem:[#allocation11 + $0x24] sm:$0xf] }
 0x157   :  { %v1624_v17 = vor.u32 %v1836_v15, %v1623_v14 }
 0x158   :  { %1882 = vtanh.f32 %v619_v18  ;;  %v1625_v18 = vld [vmem:[#allocation11 + $0x28] sm:$0xf0]  ;;  %1160 = vmatpush.bf16.msrb.mxu3 %v1708_v13 }
 0x159   :  { %1120 = vmatpush.bf16.msrb.mxu0 %v1624_v17  ;;  %v949_v17 = vld [vmem:[%s2198_s8] sm:$0x3]  ;;  %s2092_s8 = smov [#allocation13]  }
 0x15a   :  { %s1195_s18 = sshll.u32 %s2092_s8, 4  ;;  %s1196_s18 = int_to_ptr.vmem [resolvable:$true] %s1195_s18 }
 0x15b   :  { %v646_v20 = vpop.f32.mrf.mxu3  ;;  %v634_v25 = vpop.f32.mrf.mxu2 }
 0x15c   :  { %v647_v26 = vadd.f32 %v646_v20, %v633_v24  ;;  %v635_v27 = vadd.f32 %v634_v25, %v432_v19  ;;  %v1628_v19 = vor.u32 %v1835_v16, %v1625_v18  ;;  %v1695_v20 = vld [vmem:[#allocation11 + $0xb0] sm:$0xf]  ;;  %v1697_v24 = vld [vmem:[#allocation11 + $0xb8] sm:$0xf0] }
 0x15d   :  { %v620_v22 = vpop.f32.mrf.mxu1 }
 0x15e   :  { %v621_v23 = vadd.f32 %v620_v22, %v607_v21  ;;  %v1883_v30 = vpop.eup %1882  ;;  %v1854_v21 = vld [vmem:[#allocation11 + $0xb4] sm:$0xf0]  ;;  %v1853_v22 = vld [vmem:[#allocation11 + $0xb4] sm:$0xf]  ;;  %1148 = vmatpush.bf16.msrb.mxu2 %v1628_v19  ;;  %v951_v19 = vperm.slane %v949_v17, 0 }
 0x15f   :  { %v1700_v25 = vor.u32 %v1853_v22, %v1697_v24  ;;  %v952_v24 = vperm.slane %v949_v17, 1 }
 0x160   :  { %1884 = vtanh.f32 %v621_v23  ;;  %v1696_v23 = vor.u32 %v1854_v21, %v1695_v20 }
 0x161   :  { %1886 = vtanh.f32 %v647_v26  ;;  %v1615_v26 = vld [vmem:[#allocation11 + $0x10] sm:$0xf]  ;;  %1161 = vmatpush.bf16.msrb.mxu3 %v1700_v25 }
 0x162   :  { %1133 = vmatpush.bf16.msrb.mxu1 %v1696_v23 }
 0x163   :  { %v648_v28 = vpop.f32.mrf.mxu3 }
 0x164   :  { %v649_v29 = vadd.f32 %v648_v28, %v635_v27  ;;  %v1834_v27 = vld [vmem:[#allocation11 + $0x14] sm:$0xf0]  ;;  %v1833_v28 = vld [vmem:[#allocation11 + $0x14] sm:$0xf] }
 0x166   :  { %v1885_v31 = vpop.eup %1884  ;;  %1888 = vtanh.f32 %v649_v29  ;;  %v1616_v29 = vor.u32 %v1834_v27, %v1615_v26 }
 0x167   :  { %v655_v32 = vpack.c.bf16 %v1885_v31, %v1883_v30  ;;  %v1887_v33 = vpop.eup %1886  ;;  %v1617_v30 = vld [vmem:[#allocation11 + $0x18] sm:$0xf0] }
 0x168   :  { %v1620_v31 = vor.u32 %v1833_v28, %v1617_v30  ;;  %1121 = vmatpush.bf16.msrb.mxu0 %v1616_v29 }
 0x169   :  { %863 = vmatmul.bf16.vlgmr.msra.gmra.mxu0 %v655_v32  ;;  %891 = vmatmul.bf16.vlgmr.msra.gmra.mxu2 %v655_v32  ;;  %v1687_v32 = vld [vmem:[#allocation11 + $0xa0] sm:$0xf] }
 0x16a   :  { %1149 = vmatpush.bf16.msrb.mxu2 %v1620_v31 }
 0x16c   :  { %v1889_v34 = vpop.eup %1888  ;;  %1122 = vmatpush.bf16.msrb.mxu0 %v1608_v41 }
 0x16d   :  { %v656_v35 = vpack.c.bf16 %v1889_v34, %v1887_v33  ;;  %v1852_v33 = vld [vmem:[#allocation11 + $0xa4] sm:$0xf0]  ;;  %v1851_v34 = vld [vmem:[#allocation11 + $0xa4] sm:$0xf] }
 0x16e   :  { %v1692_v37 = vor.u32 %v1851_v34, %v1689_v36  ;;  %1150 = vmatpush.bf16.msrb.mxu2 %v1612_v43 }
 0x16f   :  { %877 = vmatmul.bf16.vlgmr.msra.gmra.mxu1 %v656_v35  ;;  %905 = vmatmul.bf16.vlgmr.msra.gmra.mxu3 %v656_v35  ;;  %v1688_v35 = vor.u32 %v1852_v33, %v1687_v32 }
 0x170   :  { %1162 = vmatpush.bf16.msrb.mxu3 %v1692_v37 }
 0x171   :  { %1134 = vmatpush.bf16.msrb.mxu1 %v1688_v35 }
 0x174   :  { %1163 = vmatpush.bf16.msrb.mxu3 %v1684_v49 }
 0x175   :  { %1135 = vmatpush.bf16.msrb.mxu1 %v1680_v47 }
 0x178   :  { %1164 = vmatpush.bf16.msrb.mxu3 %v1676_v55 }
 0x179   :  { %1136 = vmatpush.bf16.msrb.mxu1 %v1672_v53 }
 0x1e6   :  { %v864_v56 = vpop.f32.mrf.mxu0 }
 0x1e7   :  { %v865_v61 = vadd.f32 %v864_v56, %v691_v58 }
 0x1ec   :  { %v878_v59 = vpop.f32.mrf.mxu1  ;;  %v892_v60 = vpop.f32.mrf.mxu2 }
 0x1ed   :  { %v879_v63 = vadd.f32 %v878_v59, %v865_v61  ;;  %v893_v5 = vadd.f32 %v892_v60, %v692_v0 }
 0x1ee   :  { %v866_v62 = vpop.f32.mrf.mxu0 }
 0x1ef   :  { %v867_v2 = vadd.f32 %v866_v62, %v691_v58  ;;  %1890 = vtanh.f32 %v879_v63 }
 0x1f2   :  { %v906_v1 = vpop.f32.mrf.mxu3 }
 0x1f3   :  { %v907_v7 = vadd.f32 %v906_v1, %v893_v5 }
 0x1f4   :  { %v880_v3 = vpop.f32.mrf.mxu1  ;;  %v894_v6 = vpop.f32.mrf.mxu2 }
 0x1f5   :  { %v881_v4 = vadd.f32 %v880_v3, %v867_v2  ;;  %v895_v8 = vadd.f32 %v894_v6, %v692_v0  ;;  %v1891_v11 = vpop.eup %1890 }
 0x1f7   :  { %1892 = vtanh.f32 %v881_v4 }
 0x1f8   :  { %1894 = vtanh.f32 %v907_v7 }
 0x1fa   :  { %v908_v9 = vpop.f32.mrf.mxu3 }
 0x1fb   :  { %v909_v10 = vadd.f32 %v908_v9, %v895_v8 }
 0x1fd   :  { %v1893_v12 = vpop.eup %1892  ;;  %1896 = vtanh.f32 %v909_v10 }
 0x1fe   :  { %v915_v13 = vpack.c.bf16 %v1893_v12, %v1891_v11  ;;  %v1895_v14 = vpop.eup %1894 }
 0x200   :  { %1123 = vmatmul.bf16.vlgmr.msrb.gmra.mxu0 %v915_v13  ;;  %1151 = vmatmul.bf16.vlgmr.msrb.gmra.mxu2 %v915_v13 }
 0x203   :  { %v1897_v15 = vpop.eup %1896 }
 0x204   :  { %v916_v16 = vpack.c.bf16 %v1897_v15, %v1895_v14 }
 0x206   :  { %1137 = vmatmul.bf16.vlgmr.msrb.gmra.mxu1 %v916_v16  ;;  %1165 = vmatmul.bf16.vlgmr.msrb.gmra.mxu3 %v916_v16 }
 0x27d   :  { %v1124_v18 = vpop.f32.mrf.mxu0 }
 0x27e   :  { %v1125_v20 = vadd.f32 %v1124_v18, %v951_v19 }
 0x283   :  { %v1138_v21 = vpop.f32.mrf.mxu1  ;;  %v1152_v22 = vpop.f32.mrf.mxu2 }
 0x284   :  { %v1139_v23 = vadd.f32 %v1138_v21, %v1125_v20  ;;  %v1153_v27 = vadd.f32 %v1152_v22, %v952_v24 }
 0x285   :  { %v1126_v26 = vpop.f32.mrf.mxu0 }
 0x286   :  { %v1171_v25 = vmul.f32 0.5, %v1139_v23  ;;  %v1127_v29 = vadd.f32 %v1126_v26, %v951_v19 }
 0x288   :  { %1898 = vtanh.f32 %v1171_v25 }
 0x289   :  { %v1166_v28 = vpop.f32.mrf.mxu3 }
 0x28a   :  { %v1167_v30 = vadd.f32 %v1166_v28, %v1153_v27 }
 0x28b   :  { %v1140_v31 = vpop.f32.mrf.mxu1  ;;  %v1154_v34 = vpop.f32.mrf.mxu2 }
 0x28c   :  { %v1172_v32 = vmul.f32 0.5, %v1167_v30  ;;  %v1141_v33 = vadd.f32 %v1140_v31, %v1127_v29  ;;  %v1155_v38 = vadd.f32 %v1154_v34, %v952_v24 }
 0x28e   :  { %v1899_v35 = vpop.eup %1898  ;;  %1900 = vtanh.f32 %v1172_v32  ;;  %v1173_v36 = vmul.f32 0.5, %v1141_v33 }
 0x28f   :  { %v1179_v37 = vadd.f32 1.0, %v1899_v35 }
 0x290   :  { %1902 = vtanh.f32 %v1173_v36 }
 0x291   :  { %v1183_v39 = vmul.f32 0.5, %v1179_v37  ;;  %v1168_v40 = vpop.f32.mrf.mxu3 }
 0x292   :  { %v1169_v41 = vadd.f32 %v1168_v40, %v1155_v38 }
 0x293   :  { %1187 = vst [vmem:[#allocation13] sm:$0xff] %v1183_v39 }
 0x294   :  { %v1901_v42 = vpop.eup %1900  ;;  %v1174_v43 = vmul.f32 0.5, %v1169_v41 }
 0x295   :  { %v1180_v44 = vadd.f32 1.0, %v1901_v42 }
 0x296   :  { %v1903_v45 = vpop.eup %1902  ;;  %1904 = vtanh.f32 %v1174_v43 }
 0x297   :  { %v1184_v46 = vmul.f32 0.5, %v1180_v44  ;;  %v1181_v47 = vadd.f32 1.0, %v1903_v45 }
 0x299   :  { %1188 = vst [vmem:[#allocation13 + $0x8] sm:$0xff] %v1184_v46  ;;  %v1185_v48 = vmul.f32 0.5, %v1181_v47 }
 0x29b   :  { %1189 = vst [vmem:[#allocation13 + $0x10] sm:$0xff] %v1185_v48 }
 0x29c   :  { %v1905_v49 = vpop.eup %1904 }
 0x29d   :  { %v1182_v50 = vadd.f32 1.0, %v1905_v49 }
 0x29f   :  { %v1186_v51 = vmul.f32 0.5, %v1182_v50 }
 0x2a1   :  { %1190 = vst [vmem:[#allocation13 + $0x18] sm:$0xff] %v1186_v51 }
 0x2a2   :  { %1203 = dma.vmem_to_hbm [thread:$0]  %s1196_s18, 512, %s1198_s21, [#allocation4], %s2093_s22, %s2093_s22, %s2094_s1  }
 0x2a3   :  { %2082 = dma.done.wait [#allocation4], 512  }
 0x2a4   :  { %2083 = vsyncadd [#allocation4], 4294966784 }
 0x2a5   :  { %1208 = vsyncpa [#allocation3], 1 }
 0x2a6   :  { %1209 = vsyncpa [#allocation6], 1 }
 0x2a7   :  { %1210 = vsyncpa [#allocation9], 1 }
 0x2a8   :  { %1211 = vsyncpa [#allocation12], 1 }
 0x2a9   :  { %1212 = vsyncpa [#allocation4], 1 }

// kernel: tpu_custom_call.1
= control target key start
LH: loop header
LB: loop body
LE: loop exit
PB: predicated region body
PF: predicated region fallthrough
CT: control target
= control target key end

     0   :  { %14 = vsyncpa [#allocation3], 0  ;;  %s2190_s0 = inlined_call_operand.hbm [shape: bf16[16,256], index: 0, kind: input, shape index: {}]   ;;  %s2191_s1 = inlined_call_operand.hbm [shape: bf16[256,256], index: 1, kind: input, shape index: {}]   ;;  %s2192_s2 = inlined_call_operand.hbm [shape: f32[1,256], index: 2, kind: input, shape index: {}]   ;;  %s2193_s3 = inlined_call_operand.hbm [shape: bf16[256,256], index: 3, kind: input, shape index: {}]   ;;  %s2194_s4 = inlined_call_operand.vmem [shape: f32[1,256], index: 4, kind: input, shape index: {}]   ;;  %s2195_s5 = inlined_call_operand.hbm [shape: bf16[256,256], index: 5, kind: input, shape index: {}]   ;;  %s2196_s6 = inlined_call_operand.vmem [shape: f32[1,256], index: 6, kind: input, shape index: {}]   ;;  %s2197_s7 = inlined_call_operand.hbm [shape: bf16[256,256], index: 7, kind: input, shape index: {}]   ;;  %s2198_s8 = inlined_call_operand.vmem [shape: f32[1,256], index: 8, kind: input, shape index: {}]   ;;  %s2199_s9 = inlined_call_operand.hbm [shape: f32[16,256], index: 9, kind: output, shape index: {}]  }
   0x1   :  { %15 = vsyncpa [#allocation6], 0 }
   0x2   :  { %16 = vsyncpa [#allocation9], 0 }
   0x3   :  { %17 = vsyncpa [#allocation12], 0 }
   0x4   :  { %18 = vsyncpa [#allocation4], 0  ;;  %s36_s11 = sshll.u32 %s2191_s1, 4  ;;  %s2084_s12 = smov [#allocation5]   ;;  %s37_s11 = int_to_ptr.hbm [resolvable:$true] %s36_s11 }
   0x5   :  { %s38_s13 = sshll.u32 %s2084_s12, 4  ;;  %s60_s16 = sshll.u32 %s2193_s3, 4  ;;  %s39_s13 = int_to_ptr.vmem [resolvable:$true] %s38_s13  ;;  %s61_s16 = int_to_ptr.hbm [resolvable:$true] %s60_s16 }
   0x6   :  { %s2085_s17 = smov 128   ;;  %s2086_s18 = smov 8  }
   0x7   :  { %44 = dma.hbm_to_vmem [thread:$0]  %s37_s11, 4096, %s39_s13, [#allocation6], %s2085_s17, %s2085_s17, %s2086_s18  }
   0x8   :  { %s2087_s19 = smov [#allocation8]   ;;  %s23_s1 = sshll.u32 %s2190_s0, 4  ;;  %s24_s1 = int_to_ptr.hbm [resolvable:$true] %s23_s1 }
   0x9   :  { %s62_s20 = sshll.u32 %s2087_s19, 4  ;;  %s50_s24 = sshll.u32 %s2192_s2, 4  ;;  %s63_s20 = int_to_ptr.vmem [resolvable:$true] %s62_s20  ;;  %s51_s24 = int_to_ptr.hbm [resolvable:$true] %s50_s24 }
   0xa   :  { %68 = dma.hbm_to_vmem [thread:$0]  %s61_s16, 4096, %s63_s20, [#allocation9], %s2085_s17, %s2085_s17, %s2086_s18  }
   0xb   :  { %s2088_s25 = smov [#allocation2]   ;;  %s2089_s27 = smov [#allocation7]  }
   0xc   :  { %s25_s26 = sshll.u32 %s2088_s25, 4  ;;  %s52_s0 = sshll.u32 %s2089_s27, 4  ;;  %s26_s26 = int_to_ptr.vmem [resolvable:$true] %s25_s26  ;;  %s53_s0 = int_to_ptr.vmem [resolvable:$true] %s52_s0 }
   0xd   :  { %31 = dma.hbm_to_vmem [thread:$0]  %s24_s1, 256, %s26_s26, [#allocation3], %s2085_s17, %s2085_s17, %s2086_s18  }
   0xe   :  { %s75_s30 = sshll.u32 %s2195_s5, 4  ;;  %s90_s2 = sshll.u32 %s2197_s7, 4  ;;  %s76_s30 = int_to_ptr.hbm [resolvable:$true] %s75_s30  ;;  %s91_s2 = int_to_ptr.hbm [resolvable:$true] %s90_s2 }
   0xf   :  { %55 = dma.hbm_to_vmem [thread:$0]  %s51_s24, 32, %s53_s0, [#allocation6]  }
  0x10   :  { %s2090_s12 = smov [#allocation10]   ;;  %s2091_s14 = smov [#allocation11]  }
  0x11   :  { %s77_s13 = sshll.u32 %s2090_s12, 4  ;;  %s92_s15 = sshll.u32 %s2091_s14, 4  ;;  %s78_s13 = int_to_ptr.vmem [resolvable:$true] %s77_s13  ;;  %s93_s15 = int_to_ptr.vmem [resolvable:$true] %s92_s15 }
  0x12   :  { %83 = dma.hbm_to_vmem [thread:$0]  %s76_s30, 4096, %s78_s13, [#allocation9], %s2085_s17, %s2085_s17, %s2086_s18  }
  0x13   :  { %98 = dma.hbm_to_vmem [thread:$0]  %s91_s2, 4096, %s93_s15, [#allocation12], %s2085_s17, %s2085_s17, %s2086_s18  }
  0x14   :  { %2074 = dma.done.wait [#allocation3], 256  }
  0x15   :  { %2075 = vsyncadd [#allocation3], 4294967040 }
  0x16   :  { %2076 = dma.done.wait [#allocation6], 4128  }
  0x17   :  { %2077 = vsyncadd [#allocation6], 4294963168 }
  0x18   :  { %2078 = dma.done.wait [#allocation9], 8192  }
  0x19   :  { %2079 = vsyncadd [#allocation9], 4294959104 }
  0x1a   :  { %2080 = dma.done.wait [#allocation12], 4096  }
  0x1b   :  { %2081 = vsyncadd [#allocation12], 4294963200  ;;  %v1279_v0 = vld [vmem:[#allocation5 + $0x70] sm:$0xf]  ;;  %v1750_v1 = vld [vmem:[#allocation5 + $0x74] sm:$0xf0] }
  0x1c   :  { %v1343_v2 = vld [vmem:[#allocation5 + $0xf0] sm:$0xf]  ;;  %v1280_v3 = vor.u32 %v1750_v1, %v1279_v0  ;;  %v1766_v4 = vld [vmem:[#allocation5 + $0xf4] sm:$0xf0]  ;;  %v1749_v5 = vld [vmem:[#allocation5 + $0x74] sm:$0xf] }
  0x1d   :  { %v1281_v6 = vld [vmem:[#allocation5 + $0x78] sm:$0xf0]  ;;  %v1344_v7 = vor.u32 %v1766_v4, %v1343_v2  ;;  %v1765_v9 = vld [vmem:[#allocation5 + $0xf4] sm:$0xf]  ;;  %v1271_v11 = vld [vmem:[#allocation5 + $0x60] sm:$0xf] }
  0x1e   :  { %v1284_v8 = vor.u32 %v1749_v5, %v1281_v6  ;;  %v1345_v10 = vld [vmem:[#allocation5 + $0xf8] sm:$0xf0]  ;;  %335 = vmatpush.bf16.msra.mxu0 %v1280_v3  ;;  %v1748_v13 = vld [vmem:[#allocation5 + $0x64] sm:$0xf0]  ;;  %v1335_v14 = vld [vmem:[#allocation5 + $0xe0] sm:$0xf] }
  0x1f   :  { %v1348_v12 = vor.u32 %v1765_v9, %v1345_v10  ;;  %v1764_v15 = vld [vmem:[#allocation5 + $0xe4] sm:$0xf0]  ;;  %349 = vmatpush.bf16.msra.mxu1 %v1344_v7  ;;  %v1272_v16 = vor.u32 %v1748_v13, %v1271_v11  ;;  %v1747_v18 = vld [vmem:[#allocation5 + $0x64] sm:$0xf]  ;;  %v1273_v19 = vld [vmem:[#allocation5 + $0x68] sm:$0xf0] }
  0x20   :  { %363 = vmatpush.bf16.msra.mxu2 %v1284_v8  ;;  %v1336_v17 = vor.u32 %v1764_v15, %v1335_v14  ;;  %v1763_v20 = vld [vmem:[#allocation5 + $0xe4] sm:$0xf]  ;;  %v1276_v21 = vor.u32 %v1747_v18, %v1273_v19  ;;  %v1337_v22 = vld [vmem:[#allocation5 + $0xe8] sm:$0xf0]  ;;  %v1263_v23 = vld [vmem:[#allocation5 + $0x50] sm:$0xf] }
  0x21   :  { %377 = vmatpush.bf16.msra.mxu3 %v1348_v12  ;;  %v1746_v24 = vld [vmem:[#allocation5 + $0x54] sm:$0xf0]  ;;  %v1340_v25 = vor.u32 %v1763_v20, %v1337_v22  ;;  %v1327_v26 = vld [vmem:[#allocation5 + $0xd0] sm:$0xf]  ;;  %v1745_v28 = vld [vmem:[#allocation5 + $0x54] sm:$0xf] }
  0x22   :  { %v1762_v27 = vld [vmem:[#allocation5 + $0xd4] sm:$0xf0]  ;;  %336 = vmatpush.bf16.msra.mxu0 %v1272_v16  ;;  %v1264_v29 = vor.u32 %v1746_v24, %v1263_v23  ;;  %v1265_v30 = vld [vmem:[#allocation5 + $0x58] sm:$0xf0]  ;;  %v1761_v31 = vld [vmem:[#allocation5 + $0xd4] sm:$0xf] }
  0x23   :  { %v1329_v32 = vld [vmem:[#allocation5 + $0xd8] sm:$0xf0]  ;;  %350 = vmatpush.bf16.msra.mxu1 %v1336_v17  ;;  %v1328_v33 = vor.u32 %v1762_v27, %v1327_v26  ;;  %v1268_v34 = vor.u32 %v1745_v28, %v1265_v30  ;;  %v1255_v35 = vld [vmem:[#allocation5 + $0x40] sm:$0xf]  ;;  %v1744_v36 = vld [vmem:[#allocation5 + $0x44] sm:$0xf0] }
  0x24   :  { %364 = vmatpush.bf16.msra.mxu2 %v1276_v21  ;;  %v1319_v37 = vld [vmem:[#allocation5 + $0xc0] sm:$0xf]  ;;  %v1332_v38 = vor.u32 %v1761_v31, %v1329_v32  ;;  %v1760_v39 = vld [vmem:[#allocation5 + $0xc4] sm:$0xf0]  ;;  %v1743_v40 = vld [vmem:[#allocation5 + $0x44] sm:$0xf]  ;;  %v1256_v44 = vor.u32 %v1744_v36, %v1255_v35 }
  0x25   :  { %378 = vmatpush.bf16.msra.mxu3 %v1340_v25  ;;  %v1257_v41 = vld [vmem:[#allocation5 + $0x48] sm:$0xf0]  ;;  %v1759_v42 = vld [vmem:[#allocation5 + $0xc4] sm:$0xf]  ;;  %v1320_v45 = vor.u32 %v1760_v39, %v1319_v37  ;;  %v1247_v47 = vld [vmem:[#allocation5 + $0x30] sm:$0xf] }
  0x26   :  { %v1321_v43 = vld [vmem:[#allocation5 + $0xc8] sm:$0xf0]  ;;  %337 = vmatpush.bf16.msra.mxu0 %v1264_v29  ;;  %v1260_v46 = vor.u32 %v1743_v40, %v1257_v41  ;;  %v1742_v48 = vld [vmem:[#allocation5 + $0x34] sm:$0xf0]  ;;  %v1311_v49 = vld [vmem:[#allocation5 + $0xb0] sm:$0xf] }
  0x27   :  { %351 = vmatpush.bf16.msra.mxu1 %v1328_v33  ;;  %v1324_v50 = vor.u32 %v1759_v42, %v1321_v43  ;;  %v1758_v51 = vld [vmem:[#allocation5 + $0xb4] sm:$0xf0]  ;;  %v1741_v52 = vld [vmem:[#allocation5 + $0x34] sm:$0xf]  ;;  %v1249_v53 = vld [vmem:[#allocation5 + $0x38] sm:$0xf0]  ;;  %v1248_v56 = vor.u32 %v1742_v48, %v1247_v47 }
  0x28   :  { %365 = vmatpush.bf16.msra.mxu2 %v1268_v34  ;;  %v1757_v54 = vld [vmem:[#allocation5 + $0xb4] sm:$0xf]  ;;  %v1313_v55 = vld [vmem:[#allocation5 + $0xb8] sm:$0xf0]  ;;  %v1312_v57 = vor.u32 %v1758_v51, %v1311_v49  ;;  %v1252_v58 = vor.u32 %v1741_v52, %v1249_v53  ;;  %v1239_v59 = vld [vmem:[#allocation5 + $0x20] sm:$0xf] }
  0x29   :  { %379 = vmatpush.bf16.msra.mxu3 %v1332_v38  ;;  %v1740_v60 = vld [vmem:[#allocation5 + $0x24] sm:$0xf0]  ;;  %v1303_v61 = vld [vmem:[#allocation5 + $0xa0] sm:$0xf]  ;;  %v1316_v62 = vor.u32 %v1757_v54, %v1313_v55  ;;  %v1739_v0 = vld [vmem:[#allocation5 + $0x24] sm:$0xf] }
  0x2a   :  { %338 = vmatpush.bf16.msra.mxu0 %v1256_v44  ;;  %v1756_v63 = vld [vmem:[#allocation5 + $0xa4] sm:$0xf0]  ;;  %v1241_v1 = vld [vmem:[#allocation5 + $0x28] sm:$0xf0]  ;;  %v1755_v2 = vld [vmem:[#allocation5 + $0xa4] sm:$0xf]  ;;  %v1240_v4 = vor.u32 %v1740_v60, %v1239_v59 }
  0x2b   :  { %352 = vmatpush.bf16.msra.mxu1 %v1320_v45  ;;  %v1305_v3 = vld [vmem:[#allocation5 + $0xa8] sm:$0xf0]  ;;  %v1304_v5 = vor.u32 %v1756_v63, %v1303_v61  ;;  %v1244_v6 = vor.u32 %v1739_v0, %v1241_v1  ;;  %v1231_v7 = vld [vmem:[#allocation5 + $0x10] sm:$0xf]  ;;  %v1738_v8 = vld [vmem:[#allocation5 + $0x14] sm:$0xf0] }
  0x2c   :  { %366 = vmatpush.bf16.msra.mxu2 %v1260_v46  ;;  %v1295_v9 = vld [vmem:[#allocation5 + $0x90] sm:$0xf]  ;;  %v1308_v10 = vor.u32 %v1755_v2, %v1305_v3  ;;  %v1754_v11 = vld [vmem:[#allocation5 + $0x94] sm:$0xf0]  ;;  %v1737_v12 = vld [vmem:[#allocation5 + $0x14] sm:$0xf]  ;;  %v1232_v16 = vor.u32 %v1738_v8, %v1231_v7 }
  0x2d   :  { %380 = vmatpush.bf16.msra.mxu3 %v1324_v50  ;;  %v1233_v13 = vld [vmem:[#allocation5 + $0x18] sm:$0xf0]  ;;  %v1753_v14 = vld [vmem:[#allocation5 + $0x94] sm:$0xf]  ;;  %v1223_v17 = vld [vmem:[#allocation5] sm:$0xf]  ;;  %v1296_v19 = vor.u32 %v1754_v11, %v1295_v9 }
  0x2e   :  { %339 = vmatpush.bf16.msra.mxu0 %v1248_v56  ;;  %v1297_v15 = vld [vmem:[#allocation5 + $0x98] sm:$0xf0]  ;;  %v1736_v18 = vld [vmem:[#allocation5 + $0x4] sm:$0xf0]  ;;  %v1236_v20 = vor.u32 %v1737_v12, %v1233_v13  ;;  %v1287_v21 = vld [vmem:[#allocation5 + $0x80] sm:$0xf] }
  0x2f   :  { %353 = vmatpush.bf16.msra.mxu1 %v1312_v57  ;;  %v1752_v22 = vld [vmem:[#allocation5 + $0x84] sm:$0xf0]  ;;  %v1735_v23 = vld [vmem:[#allocation5 + $0x4] sm:$0xf]  ;;  %v1300_v24 = vor.u32 %v1753_v14, %v1297_v15  ;;  %v1225_v25 = vld [vmem:[#allocation5 + $0x8] sm:$0xf0]  ;;  %v1224_v31 = vor.u32 %v1736_v18, %v1223_v17 }
  0x30   :  { %367 = vmatpush.bf16.msra.mxu2 %v1252_v58  ;;  %v1751_v26 = vld [vmem:[#allocation5 + $0x84] sm:$0xf]  ;;  %v1289_v27 = vld [vmem:[#allocation5 + $0x88] sm:$0xf0]  ;;  %v1215_v28 = vld [vmem:[#allocation2] sm:$0xf]  ;;  %v1288_v35 = vor.u32 %v1752_v22, %v1287_v21  ;;  %v1228_v36 = vor.u32 %v1735_v23, %v1225_v25 }
  0x31   :  { %381 = vmatpush.bf16.msra.mxu3 %v1316_v62  ;;  %v1407_v29 = vld [vmem:[#allocation8 + $0x70] sm:$0xf]  ;;  %v1782_v30 = vld [vmem:[#allocation8 + $0x74] sm:$0xf0]  ;;  %v1781_v33 = vld [vmem:[#allocation8 + $0x74] sm:$0xf]  ;;  %v1292_v39 = vor.u32 %v1751_v26, %v1289_v27 }
  0x32   :  { %340 = vmatpush.bf16.msra.mxu0 %v1240_v4  ;;  %v1734_v32 = vld [vmem:[#allocation2 + $0x4] sm:$0xf0]  ;;  %v1409_v34 = vld [vmem:[#allocation8 + $0x78] sm:$0xf0]  ;;  %v1733_v37 = vld [vmem:[#allocation2 + $0x4] sm:$0xf]  ;;  %v1408_v40 = vor.u32 %v1782_v30, %v1407_v29 }
  0x33   :  { %354 = vmatpush.bf16.msra.mxu1 %v1304_v5  ;;  %v1217_v38 = vld [vmem:[#allocation2 + $0x8] sm:$0xf0]  ;;  %v1399_v41 = vld [vmem:[#allocation8 + $0x60] sm:$0xf]  ;;  %v1471_v42 = vld [vmem:[#allocation8 + $0xf0] sm:$0xf]  ;;  %v1216_v44 = vor.u32 %v1734_v32, %v1215_v28  ;;  %v1412_v45 = vor.u32 %v1781_v33, %v1409_v34 }
  0x34   :  { %368 = vmatpush.bf16.msra.mxu2 %v1244_v6  ;;  %v1798_v43 = vld [vmem:[#allocation8 + $0xf4] sm:$0xf0]  ;;  %v1780_v46 = vld [vmem:[#allocation8 + $0x64] sm:$0xf0]  ;;  %v1797_v47 = vld [vmem:[#allocation8 + $0xf4] sm:$0xf]  ;;  %v1220_v49 = vor.u32 %v1733_v37, %v1217_v38 }
  0x35   :  { %382 = vmatpush.bf16.msra.mxu3 %v1308_v10  ;;  %v1473_v48 = vld [vmem:[#allocation8 + $0xf8] sm:$0xf0]  ;;  %v1779_v50 = vld [vmem:[#allocation8 + $0x64] sm:$0xf]  ;;  %v1401_v51 = vld [vmem:[#allocation8 + $0x68] sm:$0xf0]  ;;  %v1472_v52 = vor.u32 %v1798_v43, %v1471_v42  ;;  %v1400_v53 = vor.u32 %v1780_v46, %v1399_v41 }
  0x36   :  { %341 = vmatpush.bf16.msra.mxu0 %v1232_v16  ;;  %v1476_v54 = vor.u32 %v1797_v47, %v1473_v48  ;;  %v1404_v55 = vor.u32 %v1779_v50, %v1401_v51  ;;  %v1391_v56 = vld [vmem:[#allocation8 + $0x50] sm:$0xf]  ;;  %v1778_v57 = vld [vmem:[#allocation8 + $0x54] sm:$0xf0]  ;;  %v1777_v58 = vld [vmem:[#allocation8 + $0x54] sm:$0xf] }
  0x37   :  { %355 = vmatpush.bf16.msra.mxu1 %v1296_v19  ;;  %v1393_v59 = vld [vmem:[#allocation8 + $0x58] sm:$0xf0]  ;;  %v1392_v60 = vor.u32 %v1778_v57, %v1391_v56  ;;  %v1463_v62 = vld [vmem:[#allocation8 + $0xe0] sm:$0xf]  ;;  %v1796_v63 = vld [vmem:[#allocation8 + $0xe4] sm:$0xf0] }
  0x38   :  { %369 = vmatpush.bf16.msra.mxu2 %v1236_v20  ;;  %v1396_v61 = vor.u32 %v1777_v58, %v1393_v59  ;;  %v1795_v0 = vld [vmem:[#allocation8 + $0xe4] sm:$0xf]  ;;  %v1464_v1 = vor.u32 %v1796_v63, %v1463_v62  ;;  %v1465_v2 = vld [vmem:[#allocation8 + $0xe8] sm:$0xf0]  ;;  %v1383_v4 = vld [vmem:[#allocation8 + $0x40] sm:$0xf] }
  0x39   :  { %383 = vmatpush.bf16.msra.mxu3 %v1300_v24  ;;  %v1468_v3 = vor.u32 %v1795_v0, %v1465_v2  ;;  %v1776_v5 = vld [vmem:[#allocation8 + $0x44] sm:$0xf0]  ;;  %v1775_v6 = vld [vmem:[#allocation8 + $0x44] sm:$0xf]  ;;  %v1385_v8 = vld [vmem:[#allocation8 + $0x48] sm:$0xf0] }
  0x3a   :  { %342 = vmatpush.bf16.msra.mxu0 %v1224_v31  ;;  %v1384_v7 = vor.u32 %v1776_v5, %v1383_v4  ;;  %v1388_v9 = vor.u32 %v1775_v6, %v1385_v8  ;;  %v1455_v10 = vld [vmem:[#allocation8 + $0xd0] sm:$0xf]  ;;  %v1794_v11 = vld [vmem:[#allocation8 + $0xd4] sm:$0xf0]  ;;  %v1793_v12 = vld [vmem:[#allocation8 + $0xd4] sm:$0xf] }
  0x3b   :  { %356 = vmatpush.bf16.msra.mxu1 %v1288_v35  ;;  %v1456_v13 = vor.u32 %v1794_v11, %v1455_v10  ;;  %v1457_v14 = vld [vmem:[#allocation8 + $0xd8] sm:$0xf0]  ;;  %v1375_v16 = vld [vmem:[#allocation8 + $0x30] sm:$0xf]  ;;  %v1774_v17 = vld [vmem:[#allocation8 + $0x34] sm:$0xf0] }
  0x3c   :  { %370 = vmatpush.bf16.msra.mxu2 %v1228_v36  ;;  %v1460_v15 = vor.u32 %v1793_v12, %v1457_v14  ;;  %v1773_v18 = vld [vmem:[#allocation8 + $0x34] sm:$0xf]  ;;  %v1376_v19 = vor.u32 %v1774_v17, %v1375_v16  ;;  %v1377_v20 = vld [vmem:[#allocation8 + $0x38] sm:$0xf0]  ;;  %v1447_v22 = vld [vmem:[#allocation8 + $0xc0] sm:$0xf] }
  0x3d   :  { %384 = vmatpush.bf16.msra.mxu3 %v1292_v39  ;;  %343 = vmatmul.bf16.vlgmr.msra.gmra.mxu0 %v1216_v44  ;;  %v1380_v21 = vor.u32 %v1773_v18, %v1377_v20  ;;  %v1792_v23 = vld [vmem:[#allocation8 + $0xc4] sm:$0xf0]  ;;  %v1791_v24 = vld [vmem:[#allocation8 + $0xc4] sm:$0xf]  ;;  %v1449_v26 = vld [vmem:[#allocation8 + $0xc8] sm:$0xf0] }
  0x3e   :  { %595 = vmatpush.bf16.msrb.mxu0 %v1408_v40  ;;  %357 = vmatmul.bf16.vlgmr.msra.gmra.mxu1 %v1220_v49  ;;  %v1448_v25 = vor.u32 %v1792_v23, %v1447_v22  ;;  %v1452_v27 = vor.u32 %v1791_v24, %v1449_v26  ;;  %v1367_v28 = vld [vmem:[#allocation8 + $0x20] sm:$0xf]  ;;  %v1772_v29 = vld [vmem:[#allocation8 + $0x24] sm:$0xf0]  ;;  %v1771_v30 = vld [vmem:[#allocation8 + $0x24] sm:$0xf] }
  0x3f   :  { %371 = vmatmul.bf16.vlgmr.msra.gmra.mxu2 %v1216_v44  ;;  %609 = vmatpush.bf16.msrb.mxu1 %v1472_v52  ;;  %v1368_v31 = vor.u32 %v1772_v29, %v1367_v28  ;;  %v1369_v32 = vld [vmem:[#allocation8 + $0x28] sm:$0xf0]  ;;  %v1439_v34 = vld [vmem:[#allocation8 + $0xb0] sm:$0xf]  ;;  %v1790_v35 = vld [vmem:[#allocation8 + $0xb4] sm:$0xf0] }
  0x40   :  { %623 = vmatpush.bf16.msrb.mxu2 %v1412_v45  ;;  %385 = vmatmul.bf16.vlgmr.msra.gmra.mxu3 %v1220_v49  ;;  %v1372_v33 = vor.u32 %v1771_v30, %v1369_v32  ;;  %v1789_v36 = vld [vmem:[#allocation8 + $0xb4] sm:$0xf]  ;;  %v1440_v37 = vor.u32 %v1790_v35, %v1439_v34  ;;  %v1441_v38 = vld [vmem:[#allocation8 + $0xb8] sm:$0xf0]  ;;  %v1359_v40 = vld [vmem:[#allocation8 + $0x10] sm:$0xf] }
  0x41   :  { %637 = vmatpush.bf16.msrb.mxu3 %v1476_v54  ;;  %v1444_v39 = vor.u32 %v1789_v36, %v1441_v38  ;;  %v1770_v41 = vld [vmem:[#allocation8 + $0x14] sm:$0xf0]  ;;  %v1769_v42 = vld [vmem:[#allocation8 + $0x14] sm:$0xf]  ;;  %v1361_v44 = vld [vmem:[#allocation8 + $0x18] sm:$0xf0] }
  0x42   :  { %596 = vmatpush.bf16.msrb.mxu0 %v1400_v53  ;;  %v1360_v43 = vor.u32 %v1770_v41, %v1359_v40  ;;  %v1364_v45 = vor.u32 %v1769_v42, %v1361_v44  ;;  %v1431_v46 = vld [vmem:[#allocation8 + $0xa0] sm:$0xf]  ;;  %v1788_v47 = vld [vmem:[#allocation8 + $0xa4] sm:$0xf0]  ;;  %v1787_v48 = vld [vmem:[#allocation8 + $0xa4] sm:$0xf] }
  0x43   :  { %610 = vmatpush.bf16.msrb.mxu1 %v1464_v1  ;;  %v1432_v49 = vor.u32 %v1788_v47, %v1431_v46  ;;  %v1433_v50 = vld [vmem:[#allocation8 + $0xa8] sm:$0xf0]  ;;  %v1351_v52 = vld [vmem:[#allocation8] sm:$0xf]  ;;  %v1768_v53 = vld [vmem:[#allocation8 + $0x4] sm:$0xf0] }
  0x44   :  { %624 = vmatpush.bf16.msrb.mxu2 %v1404_v55  ;;  %v1436_v51 = vor.u32 %v1787_v48, %v1433_v50  ;;  %v1767_v54 = vld [vmem:[#allocation8 + $0x4] sm:$0xf]  ;;  %v1352_v55 = vor.u32 %v1768_v53, %v1351_v52  ;;  %v1353_v56 = vld [vmem:[#allocation8 + $0x8] sm:$0xf0]  ;;  %v1423_v58 = vld [vmem:[#allocation8 + $0x90] sm:$0xf] }
  0x45   :  { %638 = vmatpush.bf16.msrb.mxu3 %v1468_v3  ;;  %v1356_v57 = vor.u32 %v1767_v54, %v1353_v56  ;;  %v1786_v59 = vld [vmem:[#allocation8 + $0x94] sm:$0xf0]  ;;  %v1425_v62 = vld [vmem:[#allocation8 + $0x98] sm:$0xf0]  ;;  %v1415_v0 = vld [vmem:[#allocation8 + $0x80] sm:$0xf] }
  0x46   :  { %597 = vmatpush.bf16.msrb.mxu0 %v1392_v60  ;;  %v1785_v60 = vld [vmem:[#allocation8 + $0x94] sm:$0xf]  ;;  %v1784_v1 = vld [vmem:[#allocation8 + $0x84] sm:$0xf0]  ;;  %v1783_v2 = vld [vmem:[#allocation8 + $0x84] sm:$0xf] }
  0x47   :  { %611 = vmatpush.bf16.msrb.mxu1 %v1456_v13  ;;  %v1428_v63 = vor.u32 %v1785_v60, %v1425_v62  ;;  %v1416_v3 = vor.u32 %v1784_v1, %v1415_v0  ;;  %v1417_v4 = vld [vmem:[#allocation8 + $0x88] sm:$0xf0]  ;;  %v159_v6 = vld [vmem:[#allocation7] sm:$0x3]  ;;  %v1814_v8 = vld [vmem:[#allocation10 + $0x74] sm:$0xf0] }
  0x48   :  { %625 = vmatpush.bf16.msrb.mxu2 %v1396_v61  ;;  %v1424_v61 = vor.u32 %v1786_v59, %v1423_v58  ;;  %v1420_v5 = vor.u32 %v1783_v2, %v1417_v4  ;;  %v1537_v11 = vld [vmem:[#allocation10 + $0x78] sm:$0xf0]  ;;  %v1527_v12 = vld [vmem:[#allocation10 + $0x60] sm:$0xf]  ;;  %v1812_v13 = vld [vmem:[#allocation10 + $0x64] sm:$0xf0] }
  0x49   :  { %639 = vmatpush.bf16.msrb.mxu3 %v1460_v15  ;;  %v1811_v15 = vld [vmem:[#allocation10 + $0x64] sm:$0xf]  ;;  %v1529_v16 = vld [vmem:[#allocation10 + $0x68] sm:$0xf0]  ;;  %v161_v17 = vperm.slane %v159_v6, 0  ;;  %v162_v23 = vperm.slane %v159_v6, 1 }
  0x4a   :  { %598 = vmatpush.bf16.msrb.mxu0 %v1384_v7  ;;  %v1535_v7 = vld [vmem:[#allocation10 + $0x70] sm:$0xf]  ;;  %v1830_v44 = vld [vmem:[#allocation10 + $0xf4] sm:$0xf0]  ;;  %v1601_v47 = vld [vmem:[#allocation10 + $0xf8] sm:$0xf0] }
  0x4b   :  { %612 = vmatpush.bf16.msrb.mxu1 %v1448_v25  ;;  %v1536_v10 = vor.u32 %v1814_v8, %v1535_v7  ;;  %v1519_v48 = vld [vmem:[#allocation10 + $0x50] sm:$0xf]  ;;  %v1809_v52 = vld [vmem:[#allocation10 + $0x54] sm:$0xf]  ;;  %v1521_v53 = vld [vmem:[#allocation10 + $0x58] sm:$0xf0] }
  0x4c   :  { %626 = vmatpush.bf16.msrb.mxu2 %v1388_v9  ;;  %v1813_v9 = vld [vmem:[#allocation10 + $0x74] sm:$0xf]  ;;  %v1591_v54 = vld [vmem:[#allocation10 + $0xe0] sm:$0xf]  ;;  %v1828_v56 = vld [vmem:[#allocation10 + $0xe4] sm:$0xf0] }
  0x4d   :  { %640 = vmatpush.bf16.msrb.mxu3 %v1452_v27  ;;  %v1540_v14 = vor.u32 %v1813_v9, %v1537_v11  ;;  %v1593_v58 = vld [vmem:[#allocation10 + $0xe8] sm:$0xf0]  ;;  %v1592_v59 = vor.u32 %v1828_v56, %v1591_v54  ;;  %v1808_v62 = vld [vmem:[#allocation10 + $0x44] sm:$0xf0]  ;;  %v1826_v4 = vld [vmem:[#allocation10 + $0xd4] sm:$0xf0] }
  0x4e   :  { %599 = vmatpush.bf16.msrb.mxu0 %v1376_v19  ;;  %v1528_v19 = vor.u32 %v1812_v13, %v1527_v12  ;;  %v1513_v1 = vld [vmem:[#allocation10 + $0x48] sm:$0xf0]  ;;  %v1585_v7 = vld [vmem:[#allocation10 + $0xd8] sm:$0xf0]  ;;  %v1503_v9 = vld [vmem:[#allocation10 + $0x30] sm:$0xf] }
  0x4f   :  { %613 = vmatpush.bf16.msrb.mxu1 %v1440_v37  ;;  %v1805_v11 = vld [vmem:[#allocation10 + $0x34] sm:$0xf]  ;;  %v1505_v13 = vld [vmem:[#allocation10 + $0x38] sm:$0xf0]  ;;  %s1197_s21 = sshll.u32 %s2199_s9, 4  ;;  %s2093_s22 = smov 256   ;;  %s1198_s21 = int_to_ptr.hbm [resolvable:$true] %s1197_s21 }
  0x50   :  { %627 = vmatpush.bf16.msrb.mxu2 %v1380_v21  ;;  %v1532_v21 = vor.u32 %v1811_v15, %v1529_v16  ;;  %v1575_v15 = vld [vmem:[#allocation10 + $0xc0] sm:$0xf]  ;;  %v1824_v16 = vld [vmem:[#allocation10 + $0xc4] sm:$0xf0]  ;;  %s2094_s1 = smov 16  }
  0x51   :  { %641 = vmatpush.bf16.msrb.mxu3 %v1444_v39 }
  0x52   :  { %600 = vmatpush.bf16.msrb.mxu0 %v1368_v31 }
  0x53   :  { %614 = vmatpush.bf16.msrb.mxu1 %v1432_v49  ;;  %v1810_v49 = vld [vmem:[#allocation10 + $0x54] sm:$0xf0] }
  0x54   :  { %628 = vmatpush.bf16.msrb.mxu2 %v1372_v33 }
  0x55   :  { %642 = vmatpush.bf16.msrb.mxu3 %v1436_v51  ;;  %v1520_v51 = vor.u32 %v1810_v49, %v1519_v48  ;;  %v1481_v49 = vld [vmem:[#allocation10 + $0x8] sm:$0xf0] }
  0x56   :  { %601 = vmatpush.bf16.msrb.mxu0 %v1360_v43  ;;  %v1599_v43 = vld [vmem:[#allocation10 + $0xf0] sm:$0xf] }
  0x57   :  { %615 = vmatpush.bf16.msrb.mxu1 %v1424_v61  ;;  %v1600_v46 = vor.u32 %v1830_v44, %v1599_v43  ;;  %v1511_v61 = vld [vmem:[#allocation10 + $0x40] sm:$0xf]  ;;  %v1561_v43 = vld [vmem:[#allocation10 + $0xa8] sm:$0xf0] }
  0x58   :  { %629 = vmatpush.bf16.msrb.mxu2 %v1364_v45  ;;  %v1829_v45 = vld [vmem:[#allocation10 + $0xf4] sm:$0xf]  ;;  %v1512_v0 = vor.u32 %v1808_v62, %v1511_v61  ;;  %v1545_v61 = vld [vmem:[#allocation10 + $0x88] sm:$0xf0] }
  0x59   :  { %643 = vmatpush.bf16.msrb.mxu3 %v1428_v63  ;;  %v1604_v50 = vor.u32 %v1829_v45, %v1601_v47  ;;  %v1807_v63 = vld [vmem:[#allocation10 + $0x44] sm:$0xf]  ;;  %v1479_v45 = vld [vmem:[#allocation10] sm:$0xf] }
  0x5a   :  { %602 = vmatpush.bf16.msrb.mxu0 %v1352_v55  ;;  %v1524_v55 = vor.u32 %v1809_v52, %v1521_v53  ;;  %v1516_v2 = vor.u32 %v1807_v63, %v1513_v1  ;;  %v1799_v47 = vld [vmem:[#allocation10 + $0x4] sm:$0xf]  ;;  %v1818_v52 = vld [vmem:[#allocation10 + $0x94] sm:$0xf0]  ;;  %v1817_v53 = vld [vmem:[#allocation10 + $0x94] sm:$0xf] }
  0x5b   :  { %616 = vmatpush.bf16.msrb.mxu1 %v1416_v3  ;;  %v1583_v3 = vld [vmem:[#allocation10 + $0xd0] sm:$0xf]  ;;  %v1846_v1 = vld [vmem:[#allocation11 + $0x74] sm:$0xf0] }
  0x5c   :  { %630 = vmatpush.bf16.msrb.mxu2 %v1356_v57  ;;  %v1827_v57 = vld [vmem:[#allocation10 + $0xe4] sm:$0xf]  ;;  %v1584_v6 = vor.u32 %v1826_v4, %v1583_v3  ;;  %v1665_v4 = vld [vmem:[#allocation11 + $0x78] sm:$0xf0] }
  0x5d   :  { %644 = vmatpush.bf16.msrb.mxu3 %v1420_v5  ;;  %v1596_v60 = vor.u32 %v1827_v57, %v1593_v58  ;;  %v1825_v5 = vld [vmem:[#allocation10 + $0xd4] sm:$0xf]  ;;  %v1543_v57 = vld [vmem:[#allocation10 + $0x80] sm:$0xf]  ;;  %v1816_v58 = vld [vmem:[#allocation10 + $0x84] sm:$0xf0] }
  0x5e   :  { %855 = vmatpush.bf16.msra.mxu0 %v1536_v10  ;;  %v1588_v8 = vor.u32 %v1825_v5, %v1585_v7  ;;  %v1806_v10 = vld [vmem:[#allocation10 + $0x34] sm:$0xf0]  ;;  %v1655_v5 = vld [vmem:[#allocation11 + $0x60] sm:$0xf] }
  0x5f   :  { %869 = vmatpush.bf16.msra.mxu1 %v1600_v46  ;;  %v1504_v12 = vor.u32 %v1806_v10, %v1503_v9  ;;  %v1800_v46 = vld [vmem:[#allocation10 + $0x4] sm:$0xf0]  ;;  %v1657_v9 = vld [vmem:[#allocation11 + $0x68] sm:$0xf0] }
  0x60   :  { %883 = vmatpush.bf16.msra.mxu2 %v1540_v14  ;;  %v1508_v14 = vor.u32 %v1805_v11, %v1505_v13  ;;  %v1480_v48 = vor.u32 %v1800_v46, %v1479_v45  ;;  %v429_v10 = vld [vmem:[%s2194_s4] sm:$0x3]  ;;  %v1649_v46 = vld [vmem:[#allocation11 + $0x58] sm:$0xf0] }
  0x61   :  { %897 = vmatpush.bf16.msra.mxu3 %v1604_v50  ;;  %v1484_v50 = vor.u32 %v1799_v47, %v1481_v49  ;;  %v431_v13 = vperm.slane %v429_v10, 0  ;;  %v1719_v47 = vld [vmem:[#allocation11 + $0xe0] sm:$0xf] }
  0x62   :  { %856 = vmatpush.bf16.msra.mxu0 %v1528_v19  ;;  %v1577_v19 = vld [vmem:[#allocation10 + $0xc8] sm:$0xf0] }
  0x63   :  { %870 = vmatpush.bf16.msra.mxu1 %v1592_v59  ;;  %v1815_v59 = vld [vmem:[#allocation10 + $0x84] sm:$0xf] }
  0x64   :  { %884 = vmatpush.bf16.msra.mxu2 %v1532_v21  ;;  %v1495_v21 = vld [vmem:[#allocation10 + $0x20] sm:$0xf]  ;;  %v1548_v62 = vor.u32 %v1815_v59, %v1545_v61  ;;  %v1858_v61 = vld [vmem:[#allocation11 + $0xd4] sm:$0xf0] }
  0x65   :  { %898 = vmatpush.bf16.msra.mxu3 %v1596_v60  ;;  %v1544_v60 = vor.u32 %v1816_v58, %v1543_v57  ;;  %v1641_v58 = vld [vmem:[#allocation11 + $0x48] sm:$0xf0] }
  0x66   :  { %857 = vmatpush.bf16.msra.mxu0 %v1520_v51  ;;  %v1551_v51 = vld [vmem:[#allocation10 + $0x90] sm:$0xf] }
  0x67   :  { %871 = vmatpush.bf16.msra.mxu1 %v1584_v6  ;;  %v1552_v54 = vor.u32 %v1818_v52, %v1551_v51  ;;  %v1844_v6 = vld [vmem:[#allocation11 + $0x64] sm:$0xf0]  ;;  %v1859_v51 = vld [vmem:[#allocation11 + $0xe4] sm:$0xf]  ;;  %v1721_v52 = vld [vmem:[#allocation11 + $0xe8] sm:$0xf0] }
  0x68   :  { %885 = vmatpush.bf16.msra.mxu2 %v1524_v55  ;;  %v1553_v55 = vld [vmem:[#allocation10 + $0x98] sm:$0xf0]  ;;  %v1656_v11 = vor.u32 %v1844_v6, %v1655_v5 }
  0x69   :  { %899 = vmatpush.bf16.msra.mxu3 %v1588_v8  ;;  %v1556_v56 = vor.u32 %v1817_v53, %v1553_v55  ;;  %v1843_v8 = vld [vmem:[#allocation11 + $0x64] sm:$0xf]  ;;  %v1724_v53 = vor.u32 %v1859_v51, %v1721_v52  ;;  %v1840_v55 = vld [vmem:[#allocation11 + $0x44] sm:$0xf0]  ;;  %v1633_v6 = vld [vmem:[#allocation11 + $0x38] sm:$0xf0] }
  0x6a   :  { %858 = vmatpush.bf16.msra.mxu0 %v1512_v0  ;;  %v1663_v0 = vld [vmem:[#allocation11 + $0x70] sm:$0xf]  ;;  %v1848_v51 = vld [vmem:[#allocation11 + $0x84] sm:$0xf0]  ;;  %v1847_v52 = vld [vmem:[#allocation11 + $0x84] sm:$0xf] }
  0x6b   :  { %v1664_v3 = vor.u32 %v1846_v1, %v1663_v0  ;;  %v1713_v0 = vld [vmem:[#allocation11 + $0xd8] sm:$0xf0] }
  0x6c   :  { %886 = vmatpush.bf16.msra.mxu2 %v1516_v2  ;;  %v1845_v2 = vld [vmem:[#allocation11 + $0x74] sm:$0xf] }
  0x6d   :  { %v1668_v7 = vor.u32 %v1845_v2, %v1665_v4  ;;  %v1631_v2 = vld [vmem:[#allocation11 + $0x30] sm:$0xf]  ;;  %v1837_v4 = vld [vmem:[#allocation11 + $0x34] sm:$0xf] }
  0x6e   :  { %859 = vmatpush.bf16.msra.mxu0 %v1504_v12  ;;  %v1660_v12 = vor.u32 %v1843_v8, %v1657_v9  ;;  %v1703_v8 = vld [vmem:[#allocation11 + $0xc0] sm:$0xf]  ;;  %v1856_v9 = vld [vmem:[#allocation11 + $0xc4] sm:$0xf0] }
  0x70   :  { %887 = vmatpush.bf16.msra.mxu2 %v1508_v14 }
  0xba   :  { %v344_v18 = vpop.f32.mrf.mxu0 }
  0xbb   :  { %v358_v20 = vpop.f32.mrf.mxu1  ;;  %v345_v22 = vadd.f32 %v344_v18, %v161_v17  ;;  %v1576_v18 = vor.u32 %v1824_v16, %v1575_v15 }
  0xbd   :  { %v359_v25 = vadd.f32 %v358_v20, %v345_v22  ;;  %v1804_v22 = vld [vmem:[#allocation10 + $0x24] sm:$0xf0]  ;;  %872 = vmatpush.bf16.msra.mxu1 %v1576_v18 }
  0xbf   :  { %1874 = vtanh.f32 %v359_v25  ;;  %v1497_v25 = vld [vmem:[#allocation10 + $0x28] sm:$0xf0] }
  0xc2   :  { %v372_v24 = vpop.f32.mrf.mxu2  ;;  %v346_v27 = vpop.f32.mrf.mxu0 }
  0xc3   :  { %v386_v26 = vpop.f32.mrf.mxu3  ;;  %v347_v28 = vadd.f32 %v346_v27, %v161_v17  ;;  %v360_v29 = vpop.f32.mrf.mxu1  ;;  %v373_v30 = vadd.f32 %v372_v24, %v162_v23  ;;  %v1823_v17 = vld [vmem:[#allocation10 + $0xc4] sm:$0xf]  ;;  %v1496_v24 = vor.u32 %v1804_v22, %v1495_v21  ;;  %v1567_v27 = vld [vmem:[#allocation10 + $0xb0] sm:$0xf] }
  0xc4   :  { %v1580_v20 = vor.u32 %v1823_v17, %v1577_v19  ;;  %v432_v19 = vperm.slane %v429_v10, 1  ;;  %v1855_v10 = vld [vmem:[#allocation11 + $0xc4] sm:$0xf] }
  0xc5   :  { %v361_v31 = vadd.f32 %v360_v29, %v347_v28  ;;  %v387_v32 = vadd.f32 %v386_v26, %v373_v30  ;;  %v1875_v36 = vpop.eup %1874  ;;  %v1822_v28 = vld [vmem:[#allocation10 + $0xb4] sm:$0xf0]  ;;  %v1821_v29 = vld [vmem:[#allocation10 + $0xb4] sm:$0xf]  ;;  %860 = vmatpush.bf16.msra.mxu0 %v1496_v24 }
  0xc6   :  { %900 = vmatpush.bf16.msra.mxu3 %v1580_v20  ;;  %v1568_v30 = vor.u32 %v1822_v28, %v1567_v27 }
  0xc7   :  { %1876 = vtanh.f32 %v361_v31  ;;  %v1569_v31 = vld [vmem:[#allocation10 + $0xb8] sm:$0xf0] }
  0xc8   :  { %1878 = vtanh.f32 %v387_v32  ;;  %v1572_v32 = vor.u32 %v1821_v29, %v1569_v31  ;;  %873 = vmatpush.bf16.msra.mxu1 %v1568_v30 }
  0xca   :  { %v374_v33 = vpop.f32.mrf.mxu2  ;;  %901 = vmatpush.bf16.msra.mxu3 %v1572_v32 }
  0xcb   :  { %v375_v34 = vadd.f32 %v374_v33, %v162_v23  ;;  %v388_v35 = vpop.f32.mrf.mxu3  ;;  %v1803_v23 = vld [vmem:[#allocation10 + $0x24] sm:$0xf]  ;;  %v1487_v33 = vld [vmem:[#allocation10 + $0x10] sm:$0xf] }
  0xcc   :  { %v1500_v26 = vor.u32 %v1803_v23, %v1497_v25 }
  0xcd   :  { %v389_v37 = vadd.f32 %v388_v35, %v375_v34  ;;  %v1877_v38 = vpop.eup %1876  ;;  %v1802_v34 = vld [vmem:[#allocation10 + $0x14] sm:$0xf0]  ;;  %v1801_v35 = vld [vmem:[#allocation10 + $0x14] sm:$0xf] }
  0xce   :  { %v395_v39 = vpack.c.bf16 %v1877_v38, %v1875_v36  ;;  %v1879_v40 = vpop.eup %1878  ;;  %888 = vmatpush.bf16.msra.mxu2 %v1500_v26  ;;  %v1488_v36 = vor.u32 %v1802_v34, %v1487_v33 }
  0xcf   :  { %1880 = vtanh.f32 %v389_v37  ;;  %v1489_v37 = vld [vmem:[#allocation10 + $0x18] sm:$0xf0] }
  0xd0   :  { %603 = vmatmul.bf16.vlgmr.msrb.gmra.mxu0 %v395_v39  ;;  %631 = vmatmul.bf16.vlgmr.msrb.gmra.mxu2 %v395_v39  ;;  %v1492_v38 = vor.u32 %v1801_v35, %v1489_v37  ;;  %v1559_v39 = vld [vmem:[#allocation10 + $0xa0] sm:$0xf]  ;;  %v1862_v37 = vld [vmem:[#allocation11 + $0xf4] sm:$0xf0] }
  0xd1   :  { %861 = vmatpush.bf16.msra.mxu0 %v1488_v36  ;;  %v1727_v36 = vld [vmem:[#allocation11 + $0xf0] sm:$0xf] }
  0xd2   :  { %889 = vmatpush.bf16.msra.mxu2 %v1492_v38  ;;  %v1861_v38 = vld [vmem:[#allocation11 + $0xf4] sm:$0xf] }
  0xd5   :  { %v1881_v41 = vpop.eup %1880  ;;  %862 = vmatpush.bf16.msra.mxu0 %v1480_v48  ;;  %v1860_v48 = vld [vmem:[#allocation11 + $0xe4] sm:$0xf0] }
  0xd6   :  { %v396_v42 = vpack.c.bf16 %v1881_v41, %v1879_v40  ;;  %v1820_v40 = vld [vmem:[#allocation10 + $0xa4] sm:$0xf0]  ;;  %v1819_v41 = vld [vmem:[#allocation10 + $0xa4] sm:$0xf]  ;;  %890 = vmatpush.bf16.msra.mxu2 %v1484_v50  ;;  %v1720_v50 = vor.u32 %v1860_v48, %v1719_v47  ;;  %v1681_v48 = vld [vmem:[#allocation11 + $0x98] sm:$0xf0] }
  0xd7   :  { %v1564_v44 = vor.u32 %v1819_v41, %v1561_v43  ;;  %v1842_v43 = vld [vmem:[#allocation11 + $0x54] sm:$0xf0] }
  0xd8   :  { %617 = vmatmul.bf16.vlgmr.msrb.gmra.mxu1 %v396_v42  ;;  %645 = vmatmul.bf16.vlgmr.msrb.gmra.mxu3 %v396_v42  ;;  %v1560_v42 = vor.u32 %v1820_v40, %v1559_v39  ;;  %v1728_v39 = vor.u32 %v1862_v37, %v1727_v36  ;;  %v1729_v40 = vld [vmem:[#allocation11 + $0xf8] sm:$0xf0]  ;;  %v1689_v36 = vld [vmem:[#allocation11 + $0xa8] sm:$0xf0] }
  0xd9   :  { %902 = vmatpush.bf16.msra.mxu3 %v1564_v44  ;;  %1115 = vmatpush.bf16.msrb.mxu0 %v1664_v3  ;;  %v1732_v41 = vor.u32 %v1861_v38, %v1729_v40  ;;  %v1841_v44 = vld [vmem:[#allocation11 + $0x54] sm:$0xf]  ;;  %v1838_v3 = vld [vmem:[#allocation11 + $0x34] sm:$0xf0]  ;;  %v1607_v38 = vld [vmem:[#allocation11] sm:$0xf] }
  0xda   :  { %874 = vmatpush.bf16.msra.mxu1 %v1560_v42  ;;  %1143 = vmatpush.bf16.msrb.mxu2 %v1668_v7  ;;  %v1647_v42 = vld [vmem:[#allocation11 + $0x50] sm:$0xf]  ;;  %v1652_v49 = vor.u32 %v1841_v44, %v1649_v46  ;;  %v1632_v5 = vor.u32 %v1838_v3, %v1631_v2  ;;  %v1636_v7 = vor.u32 %v1837_v4, %v1633_v6  ;;  %v1831_v40 = vld [vmem:[#allocation11 + $0x4] sm:$0xf]  ;;  %v1849_v46 = vld [vmem:[#allocation11 + $0x94] sm:$0xf] }
  0xdb   :  { %v1648_v45 = vor.u32 %v1842_v43, %v1647_v42  ;;  %v1609_v42 = vld [vmem:[#allocation11 + $0x8] sm:$0xf0]  ;;  %v1679_v44 = vld [vmem:[#allocation11 + $0x90] sm:$0xf] }
  0xdc   :  { %v1612_v43 = vor.u32 %v1831_v40, %v1609_v42 }
  0xdd   :  { %903 = vmatpush.bf16.msra.mxu3 %v1556_v56  ;;  %1116 = vmatpush.bf16.msrb.mxu0 %v1656_v11  ;;  %v1839_v56 = vld [vmem:[#allocation11 + $0x44] sm:$0xf]  ;;  %v1704_v11 = vor.u32 %v1856_v9, %v1703_v8 }
  0xde   :  { %875 = vmatpush.bf16.msra.mxu1 %v1552_v54  ;;  %1144 = vmatpush.bf16.msrb.mxu2 %v1660_v12  ;;  %v1639_v54 = vld [vmem:[#allocation11 + $0x40] sm:$0xf]  ;;  %v1644_v59 = vor.u32 %v1839_v56, %v1641_v58  ;;  %v1705_v12 = vld [vmem:[#allocation11 + $0xc8] sm:$0xf0] }
  0xdf   :  { %v1640_v57 = vor.u32 %v1840_v55, %v1639_v54  ;;  %v1673_v54 = vld [vmem:[#allocation11 + $0x88] sm:$0xf0] }
  0xe0   :  { %v1676_v55 = vor.u32 %v1847_v52, %v1673_v54 }
  0xe1   :  { %904 = vmatpush.bf16.msra.mxu3 %v1548_v62  ;;  %1117 = vmatpush.bf16.msrb.mxu0 %v1648_v45  ;;  %v1857_v62 = vld [vmem:[#allocation11 + $0xd4] sm:$0xf]  ;;  %v1850_v45 = vld [vmem:[#allocation11 + $0x94] sm:$0xf0] }
  0xe2   :  { %876 = vmatpush.bf16.msra.mxu1 %v1544_v60  ;;  %1145 = vmatpush.bf16.msrb.mxu2 %v1652_v49  ;;  %v1711_v60 = vld [vmem:[#allocation11 + $0xd0] sm:$0xf]  ;;  %v1716_v1 = vor.u32 %v1857_v62, %v1713_v0  ;;  %v1680_v47 = vor.u32 %v1850_v45, %v1679_v44  ;;  %v1684_v49 = vor.u32 %v1849_v46, %v1681_v48 }
  0xe5   :  { %1157 = vmatpush.bf16.msrb.mxu3 %v1732_v41  ;;  %1118 = vmatpush.bf16.msrb.mxu0 %v1640_v57  ;;  %v689_v57 = vld [vmem:[%s2196_s6] sm:$0x3] }
  0xe6   :  { %1129 = vmatpush.bf16.msrb.mxu1 %v1728_v39  ;;  %1146 = vmatpush.bf16.msrb.mxu2 %v1644_v59  ;;  %v1832_v39 = vld [vmem:[#allocation11 + $0x4] sm:$0xf0]  ;;  %v691_v58 = vperm.slane %v689_v57, 0  ;;  %v692_v0 = vperm.slane %v689_v57, 1 }
  0xe7   :  { %v1608_v41 = vor.u32 %v1832_v39, %v1607_v38 }
  0xe9   :  { %1158 = vmatpush.bf16.msrb.mxu3 %v1724_v53  ;;  %1119 = vmatpush.bf16.msrb.mxu0 %v1632_v5 }
  0xea   :  { %1130 = vmatpush.bf16.msrb.mxu1 %v1720_v50  ;;  %1147 = vmatpush.bf16.msrb.mxu2 %v1636_v7  ;;  %v1671_v50 = vld [vmem:[#allocation11 + $0x80] sm:$0xf] }
  0xeb   :  { %v1672_v53 = vor.u32 %v1848_v51, %v1671_v50 }
  0xed   :  { %1159 = vmatpush.bf16.msrb.mxu3 %v1716_v1 }
 0x14d   :  { %v604_v63 = vpop.f32.mrf.mxu0 }
 0x14e   :  { %v605_v16 = vadd.f32 %v604_v63, %v431_v13  ;;  %v1712_v63 = vor.u32 %v1858_v61, %v1711_v60 }
 0x150   :  { %1131 = vmatpush.bf16.msrb.mxu1 %v1712_v63 }
 0x153   :  { %v632_v15 = vpop.f32.mrf.mxu2 }
 0x154   :  { %v633_v24 = vadd.f32 %v632_v15, %v432_v19  ;;  %v1836_v15 = vld [vmem:[#allocation11 + $0x24] sm:$0xf0]  ;;  %1132 = vmatpush.bf16.msrb.mxu1 %v1704_v11 }
 0x155   :  { %v618_v14 = vpop.f32.mrf.mxu1  ;;  %v606_v17 = vpop.f32.mrf.mxu0 }
 0x156   :  { %v619_v18 = vadd.f32 %v618_v14, %v605_v16  ;;  %v607_v21 = vadd.f32 %v606_v17, %v431_v13  ;;  %v1708_v13 = vor.u32 %v1855_v10, %v1705_v12  ;;  %v1623_v14 = vld [vmem:[#allocation11 + $0x20] sm:$0xf]  ;;  %v1835_v16 = vld [vmem:[#allocation11 + $0x24] sm:$0xf] }
 0x157   :  { %v1624_v17 = vor.u32 %v1836_v15, %v1623_v14 }
 0x158   :  { %1882 = vtanh.f32 %v619_v18  ;;  %v1625_v18 = vld [vmem:[#allocation11 + $0x28] sm:$0xf0]  ;;  %1160 = vmatpush.bf16.msrb.mxu3 %v1708_v13 }
 0x159   :  { %1120 = vmatpush.bf16.msrb.mxu0 %v1624_v17  ;;  %v949_v17 = vld [vmem:[%s2198_s8] sm:$0x3]  ;;  %s2092_s8 = smov [#allocation13]  }
 0x15a   :  { %s1195_s18 = sshll.u32 %s2092_s8, 4  ;;  %s1196_s18 = int_to_ptr.vmem [resolvable:$true] %s1195_s18 }
 0x15b   :  { %v646_v20 = vpop.f32.mrf.mxu3  ;;  %v634_v25 = vpop.f32.mrf.mxu2 }
 0x15c   :  { %v647_v26 = vadd.f32 %v646_v20, %v633_v24  ;;  %v635_v27 = vadd.f32 %v634_v25, %v432_v19  ;;  %v1628_v19 = vor.u32 %v1835_v16, %v1625_v18  ;;  %v1695_v20 = vld [vmem:[#allocation11 + $0xb0] sm:$0xf]  ;;  %v1697_v24 = vld [vmem:[#allocation11 + $0xb8] sm:$0xf0] }
 0x15d   :  { %v620_v22 = vpop.f32.mrf.mxu1 }
 0x15e   :  { %v621_v23 = vadd.f32 %v620_v22, %v607_v21  ;;  %v1883_v30 = vpop.eup %1882  ;;  %v1854_v21 = vld [vmem:[#allocation11 + $0xb4] sm:$0xf0]  ;;  %v1853_v22 = vld [vmem:[#allocation11 + $0xb4] sm:$0xf]  ;;  %1148 = vmatpush.bf16.msrb.mxu2 %v1628_v19  ;;  %v951_v19 = vperm.slane %v949_v17, 0 }
 0x15f   :  { %v1700_v25 = vor.u32 %v1853_v22, %v1697_v24  ;;  %v952_v24 = vperm.slane %v949_v17, 1 }
 0x160   :  { %1884 = vtanh.f32 %v621_v23  ;;  %v1696_v23 = vor.u32 %v1854_v21, %v1695_v20 }
 0x161   :  { %1886 = vtanh.f32 %v647_v26  ;;  %v1615_v26 = vld [vmem:[#allocation11 + $0x10] sm:$0xf]  ;;  %1161 = vmatpush.bf16.msrb.mxu3 %v1700_v25 }
 0x162   :  { %1133 = vmatpush.bf16.msrb.mxu1 %v1696_v23 }
 0x163   :  { %v648_v28 = vpop.f32.mrf.mxu3 }
 0x164   :  { %v649_v29 = vadd.f32 %v648_v28, %v635_v27  ;;  %v1834_v27 = vld [vmem:[#allocation11 + $0x14] sm:$0xf0]  ;;  %v1833_v28 = vld [vmem:[#allocation11 + $0x14] sm:$0xf] }
 0x166   :  { %v1885_v31 = vpop.eup %1884  ;;  %1888 = vtanh.f32 %v649_v29  ;;  %v1616_v29 = vor.u32 %v1834_v27, %v1615_v26 }
 0x167   :  { %v655_v32 = vpack.c.bf16 %v1885_v31, %v1883_v30  ;;  %v1887_v33 = vpop.eup %1886  ;;  %v1617_v30 = vld [vmem:[#allocation11 + $0x18] sm:$0xf0] }
 0x168   :  { %v1620_v31 = vor.u32 %v1833_v28, %v1617_v30  ;;  %1121 = vmatpush.bf16.msrb.mxu0 %v1616_v29 }
 0x169   :  { %863 = vmatmul.bf16.vlgmr.msra.gmra.mxu0 %v655_v32  ;;  %891 = vmatmul.bf16.vlgmr.msra.gmra.mxu2 %v655_v32  ;;  %v1687_v32 = vld [vmem:[#allocation11 + $0xa0] sm:$0xf] }
 0x16a   :  { %1149 = vmatpush.bf16.msrb.mxu2 %v1620_v31 }
 0x16c   :  { %v1889_v34 = vpop.eup %1888  ;;  %1122 = vmatpush.bf16.msrb.mxu0 %v1608_v41 }
 0x16d   :  { %v656_v35 = vpack.c.bf16 %v1889_v34, %v1887_v33  ;;  %v1852_v33 = vld [vmem:[#allocation11 + $0xa4] sm:$0xf0]  ;;  %v1851_v34 = vld [vmem:[#allocation11 + $0xa4] sm:$0xf] }
 0x16e   :  { %v1692_v37 = vor.u32 %v1851_v34, %v1689_v36  ;;  %1150 = vmatpush.bf16.msrb.mxu2 %v1612_v43 }
 0x16f   :  { %877 = vmatmul.bf16.vlgmr.msra.gmra.mxu1 %v656_v35  ;;  %905 = vmatmul.bf16.vlgmr.msra.gmra.mxu3 %v656_v35  ;;  %v1688_v35 = vor.u32 %v1852_v33, %v1687_v32 }
 0x170   :  { %1162 = vmatpush.bf16.msrb.mxu3 %v1692_v37 }
 0x171   :  { %1134 = vmatpush.bf16.msrb.mxu1 %v1688_v35 }
 0x174   :  { %1163 = vmatpush.bf16.msrb.mxu3 %v1684_v49 }
 0x175   :  { %1135 = vmatpush.bf16.msrb.mxu1 %v1680_v47 }
 0x178   :  { %1164 = vmatpush.bf16.msrb.mxu3 %v1676_v55 }
 0x179   :  { %1136 = vmatpush.bf16.msrb.mxu1 %v1672_v53 }
 0x1e6   :  { %v864_v56 = vpop.f32.mrf.mxu0 }
 0x1e7   :  { %v865_v61 = vadd.f32 %v864_v56, %v691_v58 }
 0x1ec   :  { %v878_v59 = vpop.f32.mrf.mxu1  ;;  %v892_v60 = vpop.f32.mrf.mxu2 }
 0x1ed   :  { %v879_v63 = vadd.f32 %v878_v59, %v865_v61  ;;  %v893_v5 = vadd.f32 %v892_v60, %v692_v0 }
 0x1ee   :  { %v866_v62 = vpop.f32.mrf.mxu0 }
 0x1ef   :  { %v867_v2 = vadd.f32 %v866_v62, %v691_v58  ;;  %1890 = vtanh.f32 %v879_v63 }
 0x1f2   :  { %v906_v1 = vpop.f32.mrf.mxu3 }
 0x1f3   :  { %v907_v7 = vadd.f32 %v906_v1, %v893_v5 }
 0x1f4   :  { %v880_v3 = vpop.f32.mrf.mxu1  ;;  %v894_v6 = vpop.f32.mrf.mxu2 }
 0x1f5   :  { %v881_v4 = vadd.f32 %v880_v3, %v867_v2  ;;  %v895_v8 = vadd.f32 %v894_v6, %v692_v0  ;;  %v1891_v11 = vpop.eup %1890 }
 0x1f7   :  { %1892 = vtanh.f32 %v881_v4 }
 0x1f8   :  { %1894 = vtanh.f32 %v907_v7 }
 0x1fa   :  { %v908_v9 = vpop.f32.mrf.mxu3 }
 0x1fb   :  { %v909_v10 = vadd.f32 %v908_v9, %v895_v8 }
 0x1fd   :  { %v1893_v12 = vpop.eup %1892  ;;  %1896 = vtanh.f32 %v909_v10 }
 0x1fe   :  { %v915_v13 = vpack.c.bf16 %v1893_v12, %v1891_v11  ;;  %v1895_v14 = vpop.eup %1894 }
 0x200   :  { %1123 = vmatmul.bf16.vlgmr.msrb.gmra.mxu0 %v915_v13  ;;  %1151 = vmatmul.bf16.vlgmr.msrb.gmra.mxu2 %v915_v13 }
 0x203   :  { %v1897_v15 = vpop.eup %1896 }
 0x204   :  { %v916_v16 = vpack.c.bf16 %v1897_v15, %v1895_v14 }
 0x206   :  { %1137 = vmatmul.bf16.vlgmr.msrb.gmra.mxu1 %v916_v16  ;;  %1165 = vmatmul.bf16.vlgmr.msrb.gmra.mxu3 %v916_v16 }
 0x27d   :  { %v1124_v18 = vpop.f32.mrf.mxu0 }
 0x27e   :  { %v1125_v20 = vadd.f32 %v1124_v18, %v951_v19 }
 0x283   :  { %v1138_v21 = vpop.f32.mrf.mxu1  ;;  %v1152_v22 = vpop.f32.mrf.mxu2 }
 0x284   :  { %v1139_v23 = vadd.f32 %v1138_v21, %v1125_v20  ;;  %v1153_v27 = vadd.f32 %v1152_v22, %v952_v24 }
 0x285   :  { %v1126_v26 = vpop.f32.mrf.mxu0 }
 0x286   :  { %v1171_v25 = vmul.f32 0.5, %v1139_v23  ;;  %v1127_v29 = vadd.f32 %v1126_v26, %v951_v19 }
 0x288   :  { %1898 = vtanh.f32 %v1171_v25 }
 0x289   :  { %v1166_v28 = vpop.f32.mrf.mxu3 }
 0x28a   :  { %v1167_v30 = vadd.f32 %v1166_v28, %v1153_v27 }
 0x28b   :  { %v1140_v31 = vpop.f32.mrf.mxu1  ;;  %v1154_v34 = vpop.f32.mrf.mxu2 }
 0x28c   :  { %v1172_v32 = vmul.f32 0.5, %v1167_v30  ;;  %v1141_v33 = vadd.f32 %v1140_v31, %v1127_v29  ;;  %v1155_v38 = vadd.f32 %v1154_v34, %v952_v24 }
 0x28e   :  { %v1899_v35 = vpop.eup %1898  ;;  %1900 = vtanh.f32 %v1172_v32  ;;  %v1173_v36 = vmul.f32 0.5, %v1141_v33 }
 0x28f   :  { %v1179_v37 = vadd.f32 1.0, %v1899_v35 }
 0x290   :  { %1902 = vtanh.f32 %v1173_v36 }
 0x291   :  { %v1183_v39 = vmul.f32 0.5, %v1179_v37  ;;  %v1168_v40 = vpop.f32.mrf.mxu3 }
 0x292   :  { %v1169_v41 = vadd.f32 %v1168_v40, %v1155_v38 }
 0x293   :  { %1187 = vst [vmem:[#allocation13] sm:$0xff] %v1183_v39 }
 0x294   :  { %v1901_v42 = vpop.eup %1900  ;;  %v1174_v43 = vmul.f32 0.5, %v1169_v41 }
 0x295   :  { %v1180_v44 = vadd.f32 1.0, %v1901_v42 }
 0x296   :  { %v1903_v45 = vpop.eup %1902  ;;  %1904 = vtanh.f32 %v1174_v43 }
 0x297   :  { %v1184_v46 = vmul.f32 0.5, %v1180_v44  ;;  %v1181_v47 = vadd.f32 1.0, %v1903_v45 }
 0x299   :  { %1188 = vst [vmem:[#allocation13 + $0x8] sm:$0xff] %v1184_v46  ;;  %v1185_v48 = vmul.f32 0.5, %v1181_v47 }
 0x29b   :  { %1189 = vst [vmem:[#allocation13 + $0x10] sm:$0xff] %v1185_v48 }
 0x29c   :  { %v1905_v49 = vpop.eup %1904 }
 0x29d   :  { %v1182_v50 = vadd.f32 1.0, %v1905_v49 }
 0x29f   :  { %v1186_v51 = vmul.f32 0.5, %v1182_v50 }
 0x2a1   :  { %1190 = vst [vmem:[#allocation13 + $0x18] sm:$0xff] %v1186_v51 }
 0x2a2   :  { %1203 = dma.vmem_to_hbm [thread:$0]  %s1196_s18, 512, %s1198_s21, [#allocation4], %s2093_s22, %s2093_s22, %s2094_s1  }
 0x2a3   :  { %2082 = dma.done.wait [#allocation4], 512  }
 0x2a4   :  { %2083 = vsyncadd [#allocation4], 4294966784 }
 0x2a5   :  { %1208 = vsyncpa [#allocation3], 1 }
 0x2a6   :  { %1209 = vsyncpa [#allocation6], 1 }
 0x2a7   :  { %1210 = vsyncpa [#allocation9], 1 }
 0x2a8   :  { %1211 = vsyncpa [#allocation12], 1 }
 0x2a9   :  { %1212 = vsyncpa [#allocation4], 1 }

</bundles_post_ra>
